<compile_context>
chip_gen: v7x
topology: tpu7x:2x2x1
jax: 0.10.0
libtpu: 0.0.40
codegen_flags: <defaults>
</compile_context>

<pallas_src>
import jax
import jax.numpy as jnp
import numpy as np
from jax import lax
from jax.experimental import pallas as pl
from jax.experimental.pallas import tpu as pltpu

# ----- small synthetic sizes consistent with the module -----
NWORDS   = 50
WORD_DIM = 32    # word_embedding_dim
HIDDEN   = 32    # hidden_dim (per direction)
NTAGS    = 8
BATCH    = 2
SEQLEN   = 8


def bilstm_tag_loss(x_flat, mask_flat, tgt_flat, wih, bih, whf, whr, wtag, btag,
                    *, T, B, H, N):
    """x_flat: (T*B, D) time-major, mask/tgt: (T*B, 1), weights pre-fused/transposed."""
    TB, D = x_flat.shape
    H4 = 4 * H

    def kernel(x_ref, mask_ref, tgt_ref, wih_ref, bih_ref, whf_ref, whr_ref,
               wtag_ref, btag_ref, loss_ref, out2h_ref):
        # ---- hoisted input projection (both directions) + bias: one batched MXU push ----
        gates_in = (jnp.dot(x_ref[...], wih_ref[...],
                            preferred_element_type=jnp.float32)
                    + bih_ref[...])                                    # (T*B, 8H)
        mask = mask_ref[...]                                           # (T*B, 1)

        whf_w = whf_ref[...]                                           # (H, 4H)
        whr_w = whr_ref[...]                                           # (H, 4H)

        # hoisted lane-id mask: PyTorch gate order i,f,g,o -> tanh only on [2H,3H)
        lane = lax.broadcasted_iota(jnp.int32, (B, H4), 1)
        is_tanh = (lane >= 2 * H) & (lane < 3 * H)

        def cell(pre, h, c, whh):
            g = pre + jnp.dot(h, whh, preferred_element_type=jnp.float32)  # (B, 4H)
            act = jnp.where(is_tanh, jnp.tanh(g), jax.nn.sigmoid(g))
            i  = act[:, 0:H]
            f  = act[:, H:2 * H]
            gg = act[:, 2 * H:3 * H]
            o  = act[:, 3 * H:4 * H]
            c_new = f * c + i * gg
            h_new = o * jnp.tanh(c_new)
            return h_new, c_new

        zeros = jnp.zeros((B, H), jnp.float32)
        hf, cf, hr, cr = zeros, zeros, zeros, zeros

        # ---- fused, fully-unrolled forward+reverse recurrence (state in vregs) ----
        for s in range(T):
            tf = s
            tr = T - 1 - s
            # forward direction (pad_packed_sequence zero-pads outputs)
            mf = mask[tf * B:(tf + 1) * B, :]
            hf, cf = cell(gates_in[tf * B:(tf + 1) * B, 0:H4], hf, cf, whf_w)
            out2h_ref[tf * B:(tf + 1) * B, 0:H] = hf * mf
            # reverse direction (packed-sequence semantics via masked state update)
            mr = mask[tr * B:(tr + 1) * B, :]
            h_new, c_new = cell(gates_in[tr * B:(tr + 1) * B, H4:2 * H4],
                                hr, cr, whr_w)
            hr = mr * h_new + (1.0 - mr) * hr
            cr = mr * c_new + (1.0 - mr) * cr
            out2h_ref[tr * B:(tr + 1) * B, H:2 * H] = h_new * mr

        # ---- batched tag projection + masked cross-entropy over all timesteps ----
        logits = (jnp.dot(out2h_ref[...], wtag_ref[...],
                          preferred_element_type=jnp.float32)
                  + btag_ref[...])                                     # (T*B, N)
        mx = jnp.max(logits, axis=-1, keepdims=True)
        lse = mx + jnp.log(jnp.sum(jnp.exp(logits - mx), axis=-1, keepdims=True))
        ids = lax.broadcasted_iota(jnp.int32, (TB, N), 1)
        onehot = (ids == tgt_ref[...]).astype(jnp.float32)
        tgt_logit = jnp.sum(onehot * logits, axis=-1, keepdims=True)
        ce = (lse - tgt_logit) * mask                                  # (T*B, 1)
        loss_ref[...] = jnp.full((1, 1), jnp.sum(ce) / (T * B), dtype=jnp.float32)

    ins = (x_flat, mask_flat, tgt_flat, wih, bih, whf, whr, wtag, btag)

    def _full_spec(shape):
        nd = len(shape)
        return pl.BlockSpec(shape, lambda i, _nd=nd: (0,) * _nd)

    loss = pl.pallas_call(
        kernel,
        out_shape=jax.ShapeDtypeStruct((1, 1), jnp.float32),
        grid=(1,),
        in_specs=[_full_spec(a.shape) for a in ins],
        out_specs=_full_spec((1, 1)),
        scratch_shapes=[pltpu.VMEM((TB, 2 * H), jnp.float32)],   # combined fwd|rev outputs
        compiler_params=pltpu.CompilerParams(dimension_semantics=("arbitrary",)),
    )(*ins)
    return loss[0, 0]


def init_params(key):
    ks = jax.random.split(key, 5)
    s = 0.1
    word_emb = s * jax.random.normal(ks[0], (NWORDS, WORD_DIM), jnp.float32)

    def lstm_dir(k):
        k1, k2, k3, k4 = jax.random.split(k, 4)
        w_ih = s * jax.random.normal(k1, (4 * HIDDEN, WORD_DIM), jnp.float32)
        w_hh = s * jax.random.normal(k2, (4 * HIDDEN, HIDDEN), jnp.float32)
        b_ih = s * jax.random.normal(k3, (4 * HIDDEN,), jnp.float32)
        b_hh = s * jax.random.normal(k4, (4 * HIDDEN,), jnp.float32)
        return w_ih.T, w_hh.T, (b_ih + b_hh).reshape(1, 4 * HIDDEN)

    wif, whf, bf = lstm_dir(ks[1])
    wir, whr, br = lstm_dir(ks[2])
    w_tag = s * jax.random.normal(ks[3], (NTAGS, 2 * HIDDEN), jnp.float32)  # nn.Linear weight
    b_tag = s * jax.random.normal(ks[4], (NTAGS,), jnp.float32)
    return dict(
        word_emb=word_emb,
        wif=wif, whf=whf, bf=bf,
        wir=wir, whr=whr, br=br,
        wtf=w_tag[:, :HIDDEN].T,      # forward half of lstm2tag
        wtr=w_tag[:, HIDDEN:].T,      # reverse half
        btag=b_tag.reshape(1, NTAGS),
    )


def sequence_labeling_forward(params, word_idx, sent_lens, word_mask, tag_idx):
    # glue: embedding lookup + time-major flatten (dropout p=0.0 -> identity).
    # The sort-by-length / desort in the PyTorch code is a no-op semantically:
    # the kernel handles variable lengths directly via the mask.
    del sent_lens
    B, T = word_idx.shape
    D, H, N = WORD_DIM, HIDDEN, NTAGS
    x = params["word_emb"][word_idx]                                      # (B, T, D)
    x_flat = jnp.transpose(x, (1, 0, 2)).reshape(T * B, D).astype(jnp.float32)
    mask_flat = jnp.transpose(word_mask.astype(jnp.float32), (1, 0)).reshape(T * B, 1)
    tgt_flat = jnp.transpose(tag_idx.astype(jnp.int32), (1, 0)).reshape(T * B, 1)
    # fuse per-direction input weights / biases and the tag projection halves
    wih = jnp.concatenate([params["wif"], params["wir"]], axis=1)         # (D, 8H)
    bih = jnp.concatenate([params["bf"], params["br"]], axis=1)           # (1, 8H)
    wtag = jnp.concatenate([params["wtf"], params["wtr"]], axis=0)        # (2H, N)
    return bilstm_tag_loss(x_flat, mask_flat, tgt_flat, wih, bih,
                           params["whf"], params["whr"], wtag, params["btag"],
                           T=T, B=B, H=H, N=N)


def reference_forward(params, word_idx, sent_lens, word_mask, tag_idx):
    # pure-JAX reference with identical semantics
    del sent_lens
    B, T = word_idx.shape
    H = HIDDEN
    x = params["word_emb"][word_idx]
    mask = word_mask.astype(jnp.float32)

    def cell(x_t, h, c, wih, whh, b):
        g = x_t @ wih + h @ whh + b
        i = jax.nn.sigmoid(g[:, :H]); f = jax.nn.sigmoid(g[:, H:2 * H])
        gg = jnp.tanh(g[:, 2 * H:3 * H]); o = jax.nn.sigmoid(g[:, 3 * H:])
        c_new = f * c + i * gg
        return o * jnp.tanh(c_new), c_new

    hf = jnp.zeros((B, H)); cf = jnp.zeros((B, H)); outf = []
    for t in range(T):
        hf, cf = cell(x[:, t], hf, cf, params["wif"], params["whf"], params["bf"])
        outf.append(hf * mask[:, t:t + 1])
    hr = jnp.zeros((B, H)); cr = jnp.zeros((B, H)); outr = [None] * T
    for t in range(T - 1, -1, -1):
        m = mask[:, t:t + 1]
        h_new, c_new = cell(x[:, t], hr, cr, params["wir"], params["whr"], params["br"])
        hr = m * h_new + (1 - m) * hr
        cr = m * c_new + (1 - m) * cr
        outr[t] = h_new * m
    total = 0.0
    for t in range(T):
        logit = outf[t] @ params["wtf"] + outr[t] @ params["wtr"] + params["btag"]
        mx = jnp.max(logit, axis=-1, keepdims=True)
        lse = (mx + jnp.log(jnp.sum(jnp.exp(logit - mx), axis=-1, keepdims=True)))[:, 0]
        tgt_logit = jnp.take_along_axis(logit, tag_idx[:, t][:, None], axis=-1)[:, 0]
        total = total + jnp.sum((lse - tgt_logit) * mask[:, t])
    return total / (B * T)


if __name__ == "__main__":
    key = jax.random.PRNGKey(0)
    pkey, k1, k2 = jax.random.split(key, 3)
    params = init_params(pkey)

    word_idx = jax.random.randint(k1, (BATCH, SEQLEN), 0, NWORDS, dtype=jnp.int32)
    tag_idx = jax.random.randint(k2, (BATCH, SEQLEN), 0, NTAGS, dtype=jnp.int32)
    sent_lens = jnp.array([SEQLEN, 5], dtype=jnp.int32)
    word_mask = (jnp.arange(SEQLEN)[None, :] < sent_lens[:, None]).astype(jnp.float32)

    loss = sequence_labeling_forward(params, word_idx, sent_lens, word_mask, tag_idx)
    loss = jax.block_until_ready(loss)

    ref = reference_forward(params, word_idx, sent_lens, word_mask, tag_idx)
    np.testing.assert_allclose(np.array(loss), np.array(ref), rtol=2e-3, atol=1e-5)
    print("KERNEL_OK")
</pallas_src>

<mosaic_0001>
module attributes {stable_mosaic.version = 11 : i64} {
  func.func @kernel(%arg0: i32, %arg1: memref<16x32xf32, #tpu.memory_space<vmem>>, %arg2: memref<16x1xf32, #tpu.memory_space<vmem>>, %arg3: memref<16x1xi32, #tpu.memory_space<vmem>>, %arg4: memref<32x256xf32, #tpu.memory_space<vmem>>, %arg5: memref<1x256xf32, #tpu.memory_space<vmem>>, %arg6: memref<32x128xf32, #tpu.memory_space<vmem>>, %arg7: memref<32x128xf32, #tpu.memory_space<vmem>>, %arg8: memref<64x8xf32, #tpu.memory_space<vmem>>, %arg9: memref<1x8xf32, #tpu.memory_space<vmem>>, %arg10: memref<1x1xf32, #tpu.memory_space<vmem>>, %arg11: memref<16x64xf32, #tpu.memory_space<vmem>>) attributes {dimension_semantics = [#tpu.dimension_semantics<arbitrary>], iteration_bounds = array<i64: 1>, scalar_prefetch = 0 : i64, scratch_operands = 1 : i64, tpu.core_type = #tpu.core_type<tc>, window_params = [{pipeline_mode = #tpu.pipeline_mode<synchronous>, transform_indices = @transform_0, window_bounds = array<i64: 16, 32>}, {pipeline_mode = #tpu.pipeline_mode<synchronous>, transform_indices = @transform_1, window_bounds = array<i64: 16, 1>}, {pipeline_mode = #tpu.pipeline_mode<synchronous>, transform_indices = @transform_2, window_bounds = array<i64: 16, 1>}, {pipeline_mode = #tpu.pipeline_mode<synchronous>, transform_indices = @transform_3, window_bounds = array<i64: 32, 256>}, {pipeline_mode = #tpu.pipeline_mode<synchronous>, transform_indices = @transform_4, window_bounds = array<i64: 1, 256>}, {pipeline_mode = #tpu.pipeline_mode<synchronous>, transform_indices = @transform_5, window_bounds = array<i64: 32, 128>}, {pipeline_mode = #tpu.pipeline_mode<synchronous>, transform_indices = @transform_6, window_bounds = array<i64: 32, 128>}, {pipeline_mode = #tpu.pipeline_mode<synchronous>, transform_indices = @transform_7, window_bounds = array<i64: 64, 8>}, {pipeline_mode = #tpu.pipeline_mode<synchronous>, transform_indices = @transform_8, window_bounds = array<i64: 1, 8>}, {pipeline_mode = #tpu.pipeline_mode<synchronous>, transform_indices = @transform_9, window_bounds = array<i64: 1, 1>}]} {
    %c0 = arith.constant 0 : index
    %c0_0 = arith.constant 0 : index
    %0 = vector.load %arg1[%c0, %c0_0] : memref<16x32xf32, #tpu.memory_space<vmem>>, vector<16x32xf32>
    %c0_1 = arith.constant 0 : index
    %c0_2 = arith.constant 0 : index
    %1 = vector.load %arg4[%c0_1, %c0_2] : memref<32x256xf32, #tpu.memory_space<vmem>>, vector<32x256xf32>
    %cst = arith.constant dense<0.000000e+00> : vector<16x256xf32>
    %2 = tpu.matmul %0, %1, %cst {dimension_numbers = #tpu.dot_dimension_numbers<[1], [0], [0], [1], [0, 0, 1, 1], [], []>} : vector<16x32xf32>, vector<32x256xf32>, vector<16x256xf32> -> vector<16x256xf32>
    %c0_3 = arith.constant 0 : index
    %c0_4 = arith.constant 0 : index
    %3 = vector.load %arg5[%c0_3, %c0_4] : memref<1x256xf32, #tpu.memory_space<vmem>>, vector<1x256xf32>
    %4 = vector.broadcast %3 : vector<1x256xf32> to vector<16x256xf32>
    %5 = arith.addf %2, %4 : vector<16x256xf32>
    %c0_5 = arith.constant 0 : index
    %c0_6 = arith.constant 0 : index
    %6 = vector.load %arg2[%c0_5, %c0_6] : memref<16x1xf32, #tpu.memory_space<vmem>>, vector<16x1xf32>
    %c0_7 = arith.constant 0 : index
    %c0_8 = arith.constant 0 : index
    %7 = vector.load %arg6[%c0_7, %c0_8] : memref<32x128xf32, #tpu.memory_space<vmem>>, vector<32x128xf32>
    %c0_9 = arith.constant 0 : index
    %c0_10 = arith.constant 0 : index
    %8 = vector.load %arg7[%c0_9, %c0_10] : memref<32x128xf32, #tpu.memory_space<vmem>>, vector<32x128xf32>
    %9 = tpu.iota {dimensions = array<i32: 1>} : vector<2x128xi32>
    %c64_i32 = arith.constant 64 : i32
    %10 = vector.broadcast %c64_i32 : i32 to vector<2x128xi32>
    %11 = arith.cmpi sge, %9, %10 : vector<2x128xi32>
    %c96_i32 = arith.constant 96 : i32
    %12 = vector.broadcast %c96_i32 : i32 to vector<2x128xi32>
    %13 = arith.cmpi slt, %9, %12 : vector<2x128xi32>
    %14 = arith.andi %11, %13 : vector<2x128xi1>
    %cst_11 = arith.constant 0.000000e+00 : f32
    %15 = vector.broadcast %cst_11 : f32 to vector<2x32xf32>
    %16 = vector.extract_strided_slice %6 {offsets = [0, 0], sizes = [2, 1], strides = [1, 1]} : vector<16x1xf32> to vector<2x1xf32>
    %17 = vector.extract_strided_slice %5 {offsets = [0, 0], sizes = [2, 128], strides = [1, 1]} : vector<16x256xf32> to vector<2x128xf32>
    %cst_12 = arith.constant dense<0.000000e+00> : vector<2x128xf32>
    %18 = tpu.matmul %15, %7, %cst_12 {dimension_numbers = #tpu.dot_dimension_numbers<[1], [0], [0], [1], [0, 0, 1, 1], [], []>} : vector<2x32xf32>, vector<32x128xf32>, vector<2x128xf32> -> vector<2x128xf32>
    %19 = arith.addf %17, %18 : vector<2x128xf32>
    %20 = math.tanh %19 : vector<2x128xf32>
    %21 = arith.negf %19 : vector<2x128xf32>
    %22 = math.exp %21 : vector<2x128xf32>
    %cst_13 = arith.constant 1.000000e+00 : f32
    %23 = vector.broadcast %cst_13 : f32 to vector<2x128xf32>
    %24 = arith.addf %23, %22 : vector<2x128xf32>
    %25 = arith.divf %23, %24 : vector<2x128xf32>
    %26 = arith.select %14, %20, %25 : vector<2x128xi1>, vector<2x128xf32>
    %27 = vector.extract_strided_slice %26 {offsets = [0, 0], sizes = [2, 32], strides = [1, 1]} : vector<2x128xf32> to vector<2x32xf32>
    %28 = vector.extract_strided_slice %26 {offsets = [0, 32], sizes = [2, 32], strides = [1, 1]} : vector<2x128xf32> to vector<2x32xf32>
    %29 = vector.extract_strided_slice %26 {offsets = [0, 64], sizes = [2, 32], strides = [1, 1]} : vector<2x128xf32> to vector<2x32xf32>
    %30 = vector.extract_strided_slice %26 {offsets = [0, 96], sizes = [2, 32], strides = [1, 1]} : vector<2x128xf32> to vector<2x32xf32>
    %31 = arith.mulf %28, %15 : vector<2x32xf32>
    %32 = arith.mulf %27, %29 : vector<2x32xf32>
    %33 = arith.addf %31, %32 : vector<2x32xf32>
    %34 = math.tanh %33 : vector<2x32xf32>
    %35 = arith.mulf %30, %34 : vector<2x32xf32>
    %36 = vector.broadcast %16 : vector<2x1xf32> to vector<2x32xf32>
    %37 = arith.mulf %35, %36 : vector<2x32xf32>
    %c0_14 = arith.constant 0 : index
    %c0_15 = arith.constant 0 : index
    %38 = vector.load %arg11[%c0_14, %c0_15] : memref<16x64xf32, #tpu.memory_space<vmem>>, vector<2x32xf32>
    tpu.vector_store %arg11[%c0_14, %c0_15], %37 {strides = array<i32>} : memref<16x64xf32, #tpu.memory_space<vmem>>, vector<2x32xf32>,
    %39 = vector.extract_strided_slice %6 {offsets = [14, 0], sizes = [2, 1], strides = [1, 1]} : vector<16x1xf32> to vector<2x1xf32>
    %40 = vector.extract_strided_slice %5 {offsets = [14, 128], sizes = [2, 128], strides = [1, 1]} : vector<16x256xf32> to vector<2x128xf32>
    %cst_16 = arith.constant dense<0.000000e+00> : vector<2x128xf32>
    %41 = tpu.matmul %15, %8, %cst_16 {dimension_numbers = #tpu.dot_dimension_numbers<[1], [0], [0], [1], [0, 0, 1, 1], [], []>} : vector<2x32xf32>, vector<32x128xf32>, vector<2x128xf32> -> vector<2x128xf32>
    %42 = arith.addf %40, %41 : vector<2x128xf32>
    %43 = math.tanh %42 : vector<2x128xf32>
    %44 = arith.negf %42 : vector<2x128xf32>
    %45 = math.exp %44 : vector<2x128xf32>
    %cst_17 = arith.constant 1.000000e+00 : f32
    %46 = vector.broadcast %cst_17 : f32 to vector<2x128xf32>
    %47 = arith.addf %46, %45 : vector<2x128xf32>
    %48 = arith.divf %46, %47 : vector<2x128xf32>
    %49 = arith.select %14, %43, %48 : vector<2x128xi1>, vector<2x128xf32>
    %50 = vector.extract_strided_slice %49 {offsets = [0, 0], sizes = [2, 32], strides = [1, 1]} : vector<2x128xf32> to vector<2x32xf32>
    %51 = vector.extract_strided_slice %49 {offsets = [0, 32], sizes = [2, 32], strides = [1, 1]} : vector<2x128xf32> to vector<2x32xf32>
    %52 = vector.extract_strided_slice %49 {offsets = [0, 64], sizes = [2, 32], strides = [1, 1]} : vector<2x128xf32> to vector<2x32xf32>
    %53 = vector.extract_strided_slice %49 {offsets = [0, 96], sizes = [2, 32], strides = [1, 1]} : vector<2x128xf32> to vector<2x32xf32>
    %54 = arith.mulf %51, %15 : vector<2x32xf32>
    %55 = arith.mulf %50, %52 : vector<2x32xf32>
    %56 = arith.addf %54, %55 : vector<2x32xf32>
    %57 = math.tanh %56 : vector<2x32xf32>
    %58 = arith.mulf %53, %57 : vector<2x32xf32>
    %59 = vector.broadcast %39 : vector<2x1xf32> to vector<2x32xf32>
    %60 = arith.mulf %59, %58 : vector<2x32xf32>
    %cst_18 = arith.constant 1.000000e+00 : f32
    %61 = vector.broadcast %cst_18 : f32 to vector<2x1xf32>
    %62 = arith.subf %61, %39 : vector<2x1xf32>
    %63 = vector.broadcast %62 : vector<2x1xf32> to vector<2x32xf32>
    %64 = arith.mulf %63, %15 : vector<2x32xf32>
    %65 = arith.addf %60, %64 : vector<2x32xf32>
    %66 = vector.broadcast %39 : vector<2x1xf32> to vector<2x32xf32>
    %67 = arith.mulf %66, %56 : vector<2x32xf32>
    %cst_19 = arith.constant 1.000000e+00 : f32
    %68 = vector.broadcast %cst_19 : f32 to vector<2x1xf32>
    %69 = arith.subf %68, %39 : vector<2x1xf32>
    %70 = vector.broadcast %69 : vector<2x1xf32> to vector<2x32xf32>
    %71 = arith.mulf %70, %15 : vector<2x32xf32>
    %72 = arith.addf %67, %71 : vector<2x32xf32>
    %73 = vector.broadcast %39 : vector<2x1xf32> to vector<2x32xf32>
    %74 = arith.mulf %58, %73 : vector<2x32xf32>
    %c14 = arith.constant 14 : index
    %c32 = arith.constant 32 : index
    %75 = vector.load %arg11[%c14, %c32] : memref<16x64xf32, #tpu.memory_space<vmem>>, vector<2x32xf32>
    tpu.vector_store %arg11[%c14, %c32], %74 {strides = array<i32>} : memref<16x64xf32, #tpu.memory_space<vmem>>, vector<2x32xf32>,
    %76 = vector.extract_strided_slice %6 {offsets = [2, 0], sizes = [2, 1], strides = [1, 1]} : vector<16x1xf32> to vector<2x1xf32>
    %77 = vector.extract_strided_slice %5 {offsets = [2, 0], sizes = [2, 128], strides = [1, 1]} : vector<16x256xf32> to vector<2x128xf32>
    %cst_20 = arith.constant dense<0.000000e+00> : vector<2x128xf32>
    %78 = tpu.matmul %35, %7, %cst_20 {dimension_numbers = #tpu.dot_dimension_numbers<[1], [0], [0], [1], [0, 0, 1, 1], [], []>} : vector<2x32xf32>, vector<32x128xf32>, vector<2x128xf32> -> vector<2x128xf32>
    %79 = arith.addf %77, %78 : vector<2x128xf32>
    %80 = math.tanh %79 : vector<2x128xf32>
    %81 = arith.negf %79 : vector<2x128xf32>
    %82 = math.exp %81 : vector<2x128xf32>
    %cst_21 = arith.constant 1.000000e+00 : f32
    %83 = vector.broadcast %cst_21 : f32 to vector<2x128xf32>
    %84 = arith.addf %83, %82 : vector<2x128xf32>
    %85 = arith.divf %83, %84 : vector<2x128xf32>
    %86 = arith.select %14, %80, %85 : vector<2x128xi1>, vector<2x128xf32>
    %87 = vector.extract_strided_slice %86 {offsets = [0, 0], sizes = [2, 32], strides = [1, 1]} : vector<2x128xf32> to vector<2x32xf32>
    %88 = vector.extract_strided_slice %86 {offsets = [0, 32], sizes = [2, 32], strides = [1, 1]} : vector<2x128xf32> to vector<2x32xf32>
    %89 = vector.extract_strided_slice %86 {offsets = [0, 64], sizes = [2, 32], strides = [1, 1]} : vector<2x128xf32> to vector<2x32xf32>
    %90 = vector.extract_strided_slice %86 {offsets = [0, 96], sizes = [2, 32], strides = [1, 1]} : vector<2x128xf32> to vector<2x32xf32>
    %91 = arith.mulf %88, %33 : vector<2x32xf32>
    %92 = arith.mulf %87, %89 : vector<2x32xf32>
    %93 = arith.addf %91, %92 : vector<2x32xf32>
    %94 = math.tanh %93 : vector<2x32xf32>
    %95 = arith.mulf %90, %94 : vector<2x32xf32>
    %96 = vector.broadcast %76 : vector<2x1xf32> to vector<2x32xf32>
    %97 = arith.mulf %95, %96 : vector<2x32xf32>
    %c2 = arith.constant 2 : index
    %c0_22 = arith.constant 0 : index
    %98 = vector.load %arg11[%c2, %c0_22] : memref<16x64xf32, #tpu.memory_space<vmem>>, vector<2x32xf32>
    tpu.vector_store %arg11[%c2, %c0_22], %97 {strides = array<i32>} : memref<16x64xf32, #tpu.memory_space<vmem>>, vector<2x32xf32>,
    %99 = vector.extract_strided_slice %6 {offsets = [12, 0], sizes = [2, 1], strides = [1, 1]} : vector<16x1xf32> to vector<2x1xf32>
    %100 = vector.extract_strided_slice %5 {offsets = [12, 128], sizes = [2, 128], strides = [1, 1]} : vector<16x256xf32> to vector<2x128xf32>
    %cst_23 = arith.constant dense<0.000000e+00> : vector<2x128xf32>
    %101 = tpu.matmul %65, %8, %cst_23 {dimension_numbers = #tpu.dot_dimension_numbers<[1], [0], [0], [1], [0, 0, 1, 1], [], []>} : vector<2x32xf32>, vector<32x128xf32>, vector<2x128xf32> -> vector<2x128xf32>
    %102 = arith.addf %100, %101 : vector<2x128xf32>
    %103 = math.tanh %102 : vector<2x128xf32>
    %104 = arith.negf %102 : vector<2x128xf32>
    %105 = math.exp %104 : vector<2x128xf32>
    %cst_24 = arith.constant 1.000000e+00 : f32
    %106 = vector.broadcast %cst_24 : f32 to vector<2x128xf32>
    %107 = arith.addf %106, %105 : vector<2x128xf32>
    %108 = arith.divf %106, %107 : vector<2x128xf32>
    %109 = arith.select %14, %103, %108 : vector<2x128xi1>, vector<2x128xf32>
    %110 = vector.extract_strided_slice %109 {offsets = [0, 0], sizes = [2, 32], strides = [1, 1]} : vector<2x128xf32> to vector<2x32xf32>
    %111 = vector.extract_strided_slice %109 {offsets = [0, 32], sizes = [2, 32], strides = [1, 1]} : vector<2x128xf32> to vector<2x32xf32>
    %112 = vector.extract_strided_slice %109 {offsets = [0, 64], sizes = [2, 32], strides = [1, 1]} : vector<2x128xf32> to vector<2x32xf32>
    %113 = vector.extract_strided_slice %109 {offsets = [0, 96], sizes = [2, 32], strides = [1, 1]} : vector<2x128xf32> to vector<2x32xf32>
    %114 = arith.mulf %111, %72 : vector<2x32xf32>
    %115 = arith.mulf %110, %112 : vector<2x32xf32>
    %116 = arith.addf %114, %115 : vector<2x32xf32>
    %117 = math.tanh %116 : vector<2x32xf32>
    %118 = arith.mulf %113, %117 : vector<2x32xf32>
    %119 = vector.broadcast %99 : vector<2x1xf32> to vector<2x32xf32>
    %120 = arith.mulf %119, %118 : vector<2x32xf32>
    %cst_25 = arith.constant 1.000000e+00 : f32
    %121 = vector.broadcast %cst_25 : f32 to vector<2x1xf32>
    %122 = arith.subf %121, %99 : vector<2x1xf32>
    %123 = vector.broadcast %122 : vector<2x1xf32> to vector<2x32xf32>
    %124 = arith.mulf %123, %65 : vector<2x32xf32>
    %125 = arith.addf %120, %124 : vector<2x32xf32>
    %126 = vector.broadcast %99 : vector<2x1xf32> to vector<2x32xf32>
    %127 = arith.mulf %126, %116 : vector<2x32xf32>
    %cst_26 = arith.constant 1.000000e+00 : f32
    %128 = vector.broadcast %cst_26 : f32 to vector<2x1xf32>
    %129 = arith.subf %128, %99 : vector<2x1xf32>
    %130 = vector.broadcast %129 : vector<2x1xf32> to vector<2x32xf32>
    %131 = arith.mulf %130, %72 : vector<2x32xf32>
    %132 = arith.addf %127, %131 : vector<2x32xf32>
    %133 = vector.broadcast %99 : vector<2x1xf32> to vector<2x32xf32>
    %134 = arith.mulf %118, %133 : vector<2x32xf32>
    %c12 = arith.constant 12 : index
    %c32_27 = arith.constant 32 : index
    %135 = vector.load %arg11[%c12, %c32_27] : memref<16x64xf32, #tpu.memory_space<vmem>>, vector<2x32xf32>
    tpu.vector_store %arg11[%c12, %c32_27], %134 {strides = array<i32>} : memref<16x64xf32, #tpu.memory_space<vmem>>, vector<2x32xf32>,
    %136 = vector.extract_strided_slice %6 {offsets = [4, 0], sizes = [2, 1], strides = [1, 1]} : vector<16x1xf32> to vector<2x1xf32>
    %137 = vector.extract_strided_slice %5 {offsets = [4, 0], sizes = [2, 128], strides = [1, 1]} : vector<16x256xf32> to vector<2x128xf32>
    %cst_28 = arith.constant dense<0.000000e+00> : vector<2x128xf32>
    %138 = tpu.matmul %95, %7, %cst_28 {dimension_numbers = #tpu.dot_dimension_numbers<[1], [0], [0], [1], [0, 0, 1, 1], [], []>} : vector<2x32xf32>, vector<32x128xf32>, vector<2x128xf32> -> vector<2x128xf32>
    %139 = arith.addf %137, %138 : vector<2x128xf32>
    %140 = math.tanh %139 : vector<2x128xf32>
    %141 = arith.negf %139 : vector<2x128xf32>
    %142 = math.exp %141 : vector<2x128xf32>
    %cst_29 = arith.constant 1.000000e+00 : f32
    %143 = vector.broadcast %cst_29 : f32 to vector<2x128xf32>
    %144 = arith.addf %143, %142 : vector<2x128xf32>
    %145 = arith.divf %143, %144 : vector<2x128xf32>
    %146 = arith.select %14, %140, %145 : vector<2x128xi1>, vector<2x128xf32>
    %147 = vector.extract_strided_slice %146 {offsets = [0, 0], sizes = [2, 32], strides = [1, 1]} : vector<2x128xf32> to vector<2x32xf32>
    %148 = vector.extract_strided_slice %146 {offsets = [0, 32], sizes = [2, 32], strides = [1, 1]} : vector<2x128xf32> to vector<2x32xf32>
    %149 = vector.extract_strided_slice %146 {offsets = [0, 64], sizes = [2, 32], strides = [1, 1]} : vector<2x128xf32> to vector<2x32xf32>
    %150 = vector.extract_strided_slice %146 {offsets = [0, 96], sizes = [2, 32], strides = [1, 1]} : vector<2x128xf32> to vector<2x32xf32>
    %151 = arith.mulf %148, %93 : vector<2x32xf32>
    %152 = arith.mulf %147, %149 : vector<2x32xf32>
    %153 = arith.addf %151, %152 : vector<2x32xf32>
    %154 = math.tanh %153 : vector<2x32xf32>
    %155 = arith.mulf %150, %154 : vector<2x32xf32>
    %156 = vector.broadcast %136 : vector<2x1xf32> to vector<2x32xf32>
    %157 = arith.mulf %155, %156 : vector<2x32xf32>
    %c4 = arith.constant 4 : index
    %c0_30 = arith.constant 0 : index
    %158 = vector.load %arg11[%c4, %c0_30] : memref<16x64xf32, #tpu.memory_space<vmem>>, vector<2x32xf32>
    tpu.vector_store %arg11[%c4, %c0_30], %157 {strides = array<i32>} : memref<16x64xf32, #tpu.memory_space<vmem>>, vector<2x32xf32>,
    %159 = vector.extract_strided_slice %6 {offsets = [10, 0], sizes = [2, 1], strides = [1, 1]} : vector<16x1xf32> to vector<2x1xf32>
    %160 = vector.extract_strided_slice %5 {offsets = [10, 128], sizes = [2, 128], strides = [1, 1]} : vector<16x256xf32> to vector<2x128xf32>
    %cst_31 = arith.constant dense<0.000000e+00> : vector<2x128xf32>
    %161 = tpu.matmul %125, %8, %cst_31 {dimension_numbers = #tpu.dot_dimension_numbers<[1], [0], [0], [1], [0, 0, 1, 1], [], []>} : vector<2x32xf32>, vector<32x128xf32>, vector<2x128xf32> -> vector<2x128xf32>
    %162 = arith.addf %160, %161 : vector<2x128xf32>
    %163 = math.tanh %162 : vector<2x128xf32>
    %164 = arith.negf %162 : vector<2x128xf32>
    %165 = math.exp %164 : vector<2x128xf32>
    %cst_32 = arith.constant 1.000000e+00 : f32
    %166 = vector.broadcast %cst_32 : f32 to vector<2x128xf32>
    %167 = arith.addf %166, %165 : vector<2x128xf32>
    %168 = arith.divf %166, %167 : vector<2x128xf32>
    %169 = arith.select %14, %163, %168 : vector<2x128xi1>, vector<2x128xf32>
    %170 = vector.extract_strided_slice %169 {offsets = [0, 0], sizes = [2, 32], strides = [1, 1]} : vector<2x128xf32> to vector<2x32xf32>
    %171 = vector.extract_strided_slice %169 {offsets = [0, 32], sizes = [2, 32], strides = [1, 1]} : vector<2x128xf32> to vector<2x32xf32>
    %172 = vector.extract_strided_slice %169 {offsets = [0, 64], sizes = [2, 32], strides = [1, 1]} : vector<2x128xf32> to vector<2x32xf32>
    %173 = vector.extract_strided_slice %169 {offsets = [0, 96], sizes = [2, 32], strides = [1, 1]} : vector<2x128xf32> to vector<2x32xf32>
    %174 = arith.mulf %171, %132 : vector<2x32xf32>
    %175 = arith.mulf %170, %172 : vector<2x32xf32>
    %176 = arith.addf %174, %175 : vector<2x32xf32>
    %177 = math.tanh %176 : vector<2x32xf32>
    %178 = arith.mulf %173, %177 : vector<2x32xf32>
    %179 = vector.broadcast %159 : vector<2x1xf32> to vector<2x32xf32>
    %180 = arith.mulf %179, %178 : vector<2x32xf32>
    %cst_33 = arith.constant 1.000000e+00 : f32
    %181 = vector.broadcast %cst_33 : f32 to vector<2x1xf32>
    %182 = arith.subf %181, %159 : vector<2x1xf32>
    %183 = vector.broadcast %182 : vector<2x1xf32> to vector<2x32xf32>
    %184 = arith.mulf %183, %125 : vector<2x32xf32>
    %185 = arith.addf %180, %184 : vector<2x32xf32>
    %186 = vector.broadcast %159 : vector<2x1xf32> to vector<2x32xf32>
    %187 = arith.mulf %186, %176 : vector<2x32xf32>
    %cst_34 = arith.constant 1.000000e+00 : f32
    %188 = vector.broadcast %cst_34 : f32 to vector<2x1xf32>
    %189 = arith.subf %188, %159 : vector<2x1xf32>
    %190 = vector.broadcast %189 : vector<2x1xf32> to vector<2x32xf32>
    %191 = arith.mulf %190, %132 : vector<2x32xf32>
    %192 = arith.addf %187, %191 : vector<2x32xf32>
    %193 = vector.broadcast %159 : vector<2x1xf32> to vector<2x32xf32>
    %194 = arith.mulf %178, %193 : vector<2x32xf32>
    %c10 = arith.constant 10 : index
    %c32_35 = arith.constant 32 : index
    %195 = vector.load %arg11[%c10, %c32_35] : memref<16x64xf32, #tpu.memory_space<vmem>>, vector<2x32xf32>
    tpu.vector_store %arg11[%c10, %c32_35], %194 {strides = array<i32>} : memref<16x64xf32, #tpu.memory_space<vmem>>, vector<2x32xf32>,
    %196 = vector.extract_strided_slice %6 {offsets = [6, 0], sizes = [2, 1], strides = [1, 1]} : vector<16x1xf32> to vector<2x1xf32>
    %197 = vector.extract_strided_slice %5 {offsets = [6, 0], sizes = [2, 128], strides = [1, 1]} : vector<16x256xf32> to vector<2x128xf32>
    %cst_36 = arith.constant dense<0.000000e+00> : vector<2x128xf32>
    %198 = tpu.matmul %155, %7, %cst_36 {dimension_numbers = #tpu.dot_dimension_numbers<[1], [0], [0], [1], [0, 0, 1, 1], [], []>} : vector<2x32xf32>, vector<32x128xf32>, vector<2x128xf32> -> vector<2x128xf32>
    %199 = arith.addf %197, %198 : vector<2x128xf32>
    %200 = math.tanh %199 : vector<2x128xf32>
    %201 = arith.negf %199 : vector<2x128xf32>
    %202 = math.exp %201 : vector<2x128xf32>
    %cst_37 = arith.constant 1.000000e+00 : f32
    %203 = vector.broadcast %cst_37 : f32 to vector<2x128xf32>
    %204 = arith.addf %203, %202 : vector<2x128xf32>
    %205 = arith.divf %203, %204 : vector<2x128xf32>
    %206 = arith.select %14, %200, %205 : vector<2x128xi1>, vector<2x128xf32>
    %207 = vector.extract_strided_slice %206 {offsets = [0, 0], sizes = [2, 32], strides = [1, 1]} : vector<2x128xf32> to vector<2x32xf32>
    %208 = vector.extract_strided_slice %206 {offsets = [0, 32], sizes = [2, 32], strides = [1, 1]} : vector<2x128xf32> to vector<2x32xf32>
    %209 = vector.extract_strided_slice %206 {offsets = [0, 64], sizes = [2, 32], strides = [1, 1]} : vector<2x128xf32> to vector<2x32xf32>
    %210 = vector.extract_strided_slice %206 {offsets = [0, 96], sizes = [2, 32], strides = [1, 1]} : vector<2x128xf32> to vector<2x32xf32>
    %211 = arith.mulf %208, %153 : vector<2x32xf32>
    %212 = arith.mulf %207, %209 : vector<2x32xf32>
    %213 = arith.addf %211, %212 : vector<2x32xf32>
    %214 = math.tanh %213 : vector<2x32xf32>
    %215 = arith.mulf %210, %214 : vector<2x32xf32>
    %216 = vector.broadcast %196 : vector<2x1xf32> to vector<2x32xf32>
    %217 = arith.mulf %215, %216 : vector<2x32xf32>
    %c6 = arith.constant 6 : index
    %c0_38 = arith.constant 0 : index
    %218 = vector.load %arg11[%c6, %c0_38] : memref<16x64xf32, #tpu.memory_space<vmem>>, vector<2x32xf32>
    tpu.vector_store %arg11[%c6, %c0_38], %217 {strides = array<i32>} : memref<16x64xf32, #tpu.memory_space<vmem>>, vector<2x32xf32>,
    %219 = vector.extract_strided_slice %6 {offsets = [8, 0], sizes = [2, 1], strides = [1, 1]} : vector<16x1xf32> to vector<2x1xf32>
    %220 = vector.extract_strided_slice %5 {offsets = [8, 128], sizes = [2, 128], strides = [1, 1]} : vector<16x256xf32> to vector<2x128xf32>
    %cst_39 = arith.constant dense<0.000000e+00> : vector<2x128xf32>
    %221 = tpu.matmul %185, %8, %cst_39 {dimension_numbers = #tpu.dot_dimension_numbers<[1], [0], [0], [1], [0, 0, 1, 1], [], []>} : vector<2x32xf32>, vector<32x128xf32>, vector<2x128xf32> -> vector<2x128xf32>
    %222 = arith.addf %220, %221 : vector<2x128xf32>
    %223 = math.tanh %222 : vector<2x128xf32>
    %224 = arith.negf %222 : vector<2x128xf32>
    %225 = math.exp %224 : vector<2x128xf32>
    %cst_40 = arith.constant 1.000000e+00 : f32
    %226 = vector.broadcast %cst_40 : f32 to vector<2x128xf32>
    %227 = arith.addf %226, %225 : vector<2x128xf32>
    %228 = arith.divf %226, %227 : vector<2x128xf32>
    %229 = arith.select %14, %223, %228 : vector<2x128xi1>, vector<2x128xf32>
    %230 = vector.extract_strided_slice %229 {offsets = [0, 0], sizes = [2, 32], strides = [1, 1]} : vector<2x128xf32> to vector<2x32xf32>
    %231 = vector.extract_strided_slice %229 {offsets = [0, 32], sizes = [2, 32], strides = [1, 1]} : vector<2x128xf32> to vector<2x32xf32>
    %232 = vector.extract_strided_slice %229 {offsets = [0, 64], sizes = [2, 32], strides = [1, 1]} : vector<2x128xf32> to vector<2x32xf32>
    %233 = vector.extract_strided_slice %229 {offsets = [0, 96], sizes = [2, 32], strides = [1, 1]} : vector<2x128xf32> to vector<2x32xf32>
    %234 = arith.mulf %231, %192 : vector<2x32xf32>
    %235 = arith.mulf %230, %232 : vector<2x32xf32>
    %236 = arith.addf %234, %235 : vector<2x32xf32>
    %237 = math.tanh %236 : vector<2x32xf32>
    %238 = arith.mulf %233, %237 : vector<2x32xf32>
    %239 = vector.broadcast %219 : vector<2x1xf32> to vector<2x32xf32>
    %240 = arith.mulf %239, %238 : vector<2x32xf32>
    %cst_41 = arith.constant 1.000000e+00 : f32
    %241 = vector.broadcast %cst_41 : f32 to vector<2x1xf32>
    %242 = arith.subf %241, %219 : vector<2x1xf32>
    %243 = vector.broadcast %242 : vector<2x1xf32> to vector<2x32xf32>
    %244 = arith.mulf %243, %185 : vector<2x32xf32>
    %245 = arith.addf %240, %244 : vector<2x32xf32>
    %246 = vector.broadcast %219 : vector<2x1xf32> to vector<2x32xf32>
    %247 = arith.mulf %246, %236 : vector<2x32xf32>
    %cst_42 = arith.constant 1.000000e+00 : f32
    %248 = vector.broadcast %cst_42 : f32 to vector<2x1xf32>
    %249 = arith.subf %248, %219 : vector<2x1xf32>
    %250 = vector.broadcast %249 : vector<2x1xf32> to vector<2x32xf32>
    %251 = arith.mulf %250, %192 : vector<2x32xf32>
    %252 = arith.addf %247, %251 : vector<2x32xf32>
    %253 = vector.broadcast %219 : vector<2x1xf32> to vector<2x32xf32>
    %254 = arith.mulf %238, %253 : vector<2x32xf32>
    %c8 = arith.constant 8 : index
    %c32_43 = arith.constant 32 : index
    %255 = vector.load %arg11[%c8, %c32_43] : memref<16x64xf32, #tpu.memory_space<vmem>>, vector<2x32xf32>
    tpu.vector_store %arg11[%c8, %c32_43], %254 {strides = array<i32>} : memref<16x64xf32, #tpu.memory_space<vmem>>, vector<2x32xf32>,
    %256 = vector.extract_strided_slice %6 {offsets = [8, 0], sizes = [2, 1], strides = [1, 1]} : vector<16x1xf32> to vector<2x1xf32>
    %257 = vector.extract_strided_slice %5 {offsets = [8, 0], sizes = [2, 128], strides = [1, 1]} : vector<16x256xf32> to vector<2x128xf32>
    %cst_44 = arith.constant dense<0.000000e+00> : vector<2x128xf32>
    %258 = tpu.matmul %215, %7, %cst_44 {dimension_numbers = #tpu.dot_dimension_numbers<[1], [0], [0], [1], [0, 0, 1, 1], [], []>} : vector<2x32xf32>, vector<32x128xf32>, vector<2x128xf32> -> vector<2x128xf32>
    %259 = arith.addf %257, %258 : vector<2x128xf32>
    %260 = math.tanh %259 : vector<2x128xf32>
    %261 = arith.negf %259 : vector<2x128xf32>
    %262 = math.exp %261 : vector<2x128xf32>
    %cst_45 = arith.constant 1.000000e+00 : f32
    %263 = vector.broadcast %cst_45 : f32 to vector<2x128xf32>
    %264 = arith.addf %263, %262 : vector<2x128xf32>
    %265 = arith.divf %263, %264 : vector<2x128xf32>
    %266 = arith.select %14, %260, %265 : vector<2x128xi1>, vector<2x128xf32>
    %267 = vector.extract_strided_slice %266 {offsets = [0, 0], sizes = [2, 32], strides = [1, 1]} : vector<2x128xf32> to vector<2x32xf32>
    %268 = vector.extract_strided_slice %266 {offsets = [0, 32], sizes = [2, 32], strides = [1, 1]} : vector<2x128xf32> to vector<2x32xf32>
    %269 = vector.extract_strided_slice %266 {offsets = [0, 64], sizes = [2, 32], strides = [1, 1]} : vector<2x128xf32> to vector<2x32xf32>
    %270 = vector.extract_strided_slice %266 {offsets = [0, 96], sizes = [2, 32], strides = [1, 1]} : vector<2x128xf32> to vector<2x32xf32>
    %271 = arith.mulf %268, %213 : vector<2x32xf32>
    %272 = arith.mulf %267, %269 : vector<2x32xf32>
    %273 = arith.addf %271, %272 : vector<2x32xf32>
    %274 = math.tanh %273 : vector<2x32xf32>
    %275 = arith.mulf %270, %274 : vector<2x32xf32>
    %276 = vector.broadcast %256 : vector<2x1xf32> to vector<2x32xf32>
    %277 = arith.mulf %275, %276 : vector<2x32xf32>
    %c8_46 = arith.constant 8 : index
    %c0_47 = arith.constant 0 : index
    %278 = vector.load %arg11[%c8_46, %c0_47] : memref<16x64xf32, #tpu.memory_space<vmem>>, vector<2x32xf32>
    tpu.vector_store %arg11[%c8_46, %c0_47], %277 {strides = array<i32>} : memref<16x64xf32, #tpu.memory_space<vmem>>, vector<2x32xf32>,
    %279 = vector.extract_strided_slice %6 {offsets = [6, 0], sizes = [2, 1], strides = [1, 1]} : vector<16x1xf32> to vector<2x1xf32>
    %280 = vector.extract_strided_slice %5 {offsets = [6, 128], sizes = [2, 128], strides = [1, 1]} : vector<16x256xf32> to vector<2x128xf32>
    %cst_48 = arith.constant dense<0.000000e+00> : vector<2x128xf32>
    %281 = tpu.matmul %245, %8, %cst_48 {dimension_numbers = #tpu.dot_dimension_numbers<[1], [0], [0], [1], [0, 0, 1, 1], [], []>} : vector<2x32xf32>, vector<32x128xf32>, vector<2x128xf32> -> vector<2x128xf32>
    %282 = arith.addf %280, %281 : vector<2x128xf32>
    %283 = math.tanh %282 : vector<2x128xf32>
    %284 = arith.negf %282 : vector<2x128xf32>
    %285 = math.exp %284 : vector<2x128xf32>
    %cst_49 = arith.constant 1.000000e+00 : f32
    %286 = vector.broadcast %cst_49 : f32 to vector<2x128xf32>
    %287 = arith.addf %286, %285 : vector<2x128xf32>
    %288 = arith.divf %286, %287 : vector<2x128xf32>
    %289 = arith.select %14, %283, %288 : vector<2x128xi1>, vector<2x128xf32>
    %290 = vector.extract_strided_slice %289 {offsets = [0, 0], sizes = [2, 32], strides = [1, 1]} : vector<2x128xf32> to vector<2x32xf32>
    %291 = vector.extract_strided_slice %289 {offsets = [0, 32], sizes = [2, 32], strides = [1, 1]} : vector<2x128xf32> to vector<2x32xf32>
    %292 = vector.extract_strided_slice %289 {offsets = [0, 64], sizes = [2, 32], strides = [1, 1]} : vector<2x128xf32> to vector<2x32xf32>
    %293 = vector.extract_strided_slice %289 {offsets = [0, 96], sizes = [2, 32], strides = [1, 1]} : vector<2x128xf32> to vector<2x32xf32>
    %294 = arith.mulf %291, %252 : vector<2x32xf32>
    %295 = arith.mulf %290, %292 : vector<2x32xf32>
    %296 = arith.addf %294, %295 : vector<2x32xf32>
    %297 = math.tanh %296 : vector<2x32xf32>
    %298 = arith.mulf %293, %297 : vector<2x32xf32>
    %299 = vector.broadcast %279 : vector<2x1xf32> to vector<2x32xf32>
    %300 = arith.mulf %299, %298 : vector<2x32xf32>
    %cst_50 = arith.constant 1.000000e+00 : f32
    %301 = vector.broadcast %cst_50 : f32 to vector<2x1xf32>
    %302 = arith.subf %301, %279 : vector<2x1xf32>
    %303 = vector.broadcast %302 : vector<2x1xf32> to vector<2x32xf32>
    %304 = arith.mulf %303, %245 : vector<2x32xf32>
    %305 = arith.addf %300, %304 : vector<2x32xf32>
    %306 = vector.broadcast %279 : vector<2x1xf32> to vector<2x32xf32>
    %307 = arith.mulf %306, %296 : vector<2x32xf32>
    %cst_51 = arith.constant 1.000000e+00 : f32
    %308 = vector.broadcast %cst_51 : f32 to vector<2x1xf32>
    %309 = arith.subf %308, %279 : vector<2x1xf32>
    %310 = vector.broadcast %309 : vector<2x1xf32> to vector<2x32xf32>
    %311 = arith.mulf %310, %252 : vector<2x32xf32>
    %312 = arith.addf %307, %311 : vector<2x32xf32>
    %313 = vector.broadcast %279 : vector<2x1xf32> to vector<2x32xf32>
    %314 = arith.mulf %298, %313 : vector<2x32xf32>
    %c6_52 = arith.constant 6 : index
    %c32_53 = arith.constant 32 : index
    %315 = vector.load %arg11[%c6_52, %c32_53] : memref<16x64xf32, #tpu.memory_space<vmem>>, vector<2x32xf32>
    tpu.vector_store %arg11[%c6_52, %c32_53], %314 {strides = array<i32>} : memref<16x64xf32, #tpu.memory_space<vmem>>, vector<2x32xf32>,
    %316 = vector.extract_strided_slice %6 {offsets = [10, 0], sizes = [2, 1], strides = [1, 1]} : vector<16x1xf32> to vector<2x1xf32>
    %317 = vector.extract_strided_slice %5 {offsets = [10, 0], sizes = [2, 128], strides = [1, 1]} : vector<16x256xf32> to vector<2x128xf32>
    %cst_54 = arith.constant dense<0.000000e+00> : vector<2x128xf32>
    %318 = tpu.matmul %275, %7, %cst_54 {dimension_numbers = #tpu.dot_dimension_numbers<[1], [0], [0], [1], [0, 0, 1, 1], [], []>} : vector<2x32xf32>, vector<32x128xf32>, vector<2x128xf32> -> vector<2x128xf32>
    %319 = arith.addf %317, %318 : vector<2x128xf32>
    %320 = math.tanh %319 : vector<2x128xf32>
    %321 = arith.negf %319 : vector<2x128xf32>
    %322 = math.exp %321 : vector<2x128xf32>
    %cst_55 = arith.constant 1.000000e+00 : f32
    %323 = vector.broadcast %cst_55 : f32 to vector<2x128xf32>
    %324 = arith.addf %323, %322 : vector<2x128xf32>
    %325 = arith.divf %323, %324 : vector<2x128xf32>
    %326 = arith.select %14, %320, %325 : vector<2x128xi1>, vector<2x128xf32>
    %327 = vector.extract_strided_slice %326 {offsets = [0, 0], sizes = [2, 32], strides = [1, 1]} : vector<2x128xf32> to vector<2x32xf32>
    %328 = vector.extract_strided_slice %326 {offsets = [0, 32], sizes = [2, 32], strides = [1, 1]} : vector<2x128xf32> to vector<2x32xf32>
    %329 = vector.extract_strided_slice %326 {offsets = [0, 64], sizes = [2, 32], strides = [1, 1]} : vector<2x128xf32> to vector<2x32xf32>
    %330 = vector.extract_strided_slice %326 {offsets = [0, 96], sizes = [2, 32], strides = [1, 1]} : vector<2x128xf32> to vector<2x32xf32>
    %331 = arith.mulf %328, %273 : vector<2x32xf32>
    %332 = arith.mulf %327, %329 : vector<2x32xf32>
    %333 = arith.addf %331, %332 : vector<2x32xf32>
    %334 = math.tanh %333 : vector<2x32xf32>
    %335 = arith.mulf %330, %334 : vector<2x32xf32>
    %336 = vector.broadcast %316 : vector<2x1xf32> to vector<2x32xf32>
    %337 = arith.mulf %335, %336 : vector<2x32xf32>
    %c10_56 = arith.constant 10 : index
    %c0_57 = arith.constant 0 : index
    %338 = vector.load %arg11[%c10_56, %c0_57] : memref<16x64xf32, #tpu.memory_space<vmem>>, vector<2x32xf32>
    tpu.vector_store %arg11[%c10_56, %c0_57], %337 {strides = array<i32>} : memref<16x64xf32, #tpu.memory_space<vmem>>, vector<2x32xf32>,
    %339 = vector.extract_strided_slice %6 {offsets = [4, 0], sizes = [2, 1], strides = [1, 1]} : vector<16x1xf32> to vector<2x1xf32>
    %340 = vector.extract_strided_slice %5 {offsets = [4, 128], sizes = [2, 128], strides = [1, 1]} : vector<16x256xf32> to vector<2x128xf32>
    %cst_58 = arith.constant dense<0.000000e+00> : vector<2x128xf32>
    %341 = tpu.matmul %305, %8, %cst_58 {dimension_numbers = #tpu.dot_dimension_numbers<[1], [0], [0], [1], [0, 0, 1, 1], [], []>} : vector<2x32xf32>, vector<32x128xf32>, vector<2x128xf32> -> vector<2x128xf32>
    %342 = arith.addf %340, %341 : vector<2x128xf32>
    %343 = math.tanh %342 : vector<2x128xf32>
    %344 = arith.negf %342 : vector<2x128xf32>
    %345 = math.exp %344 : vector<2x128xf32>
    %cst_59 = arith.constant 1.000000e+00 : f32
    %346 = vector.broadcast %cst_59 : f32 to vector<2x128xf32>
    %347 = arith.addf %346, %345 : vector<2x128xf32>
    %348 = arith.divf %346, %347 : vector<2x128xf32>
    %349 = arith.select %14, %343, %348 : vector<2x128xi1>, vector<2x128xf32>
    %350 = vector.extract_strided_slice %349 {offsets = [0, 0], sizes = [2, 32], strides = [1, 1]} : vector<2x128xf32> to vector<2x32xf32>
    %351 = vector.extract_strided_slice %349 {offsets = [0, 32], sizes = [2, 32], strides = [1, 1]} : vector<2x128xf32> to vector<2x32xf32>
    %352 = vector.extract_strided_slice %349 {offsets = [0, 64], sizes = [2, 32], strides = [1, 1]} : vector<2x128xf32> to vector<2x32xf32>
    %353 = vector.extract_strided_slice %349 {offsets = [0, 96], sizes = [2, 32], strides = [1, 1]} : vector<2x128xf32> to vector<2x32xf32>
    %354 = arith.mulf %351, %312 : vector<2x32xf32>
    %355 = arith.mulf %350, %352 : vector<2x32xf32>
    %356 = arith.addf %354, %355 : vector<2x32xf32>
    %357 = math.tanh %356 : vector<2x32xf32>
    %358 = arith.mulf %353, %357 : vector<2x32xf32>
    %359 = vector.broadcast %339 : vector<2x1xf32> to vector<2x32xf32>
    %360 = arith.mulf %359, %358 : vector<2x32xf32>
    %cst_60 = arith.constant 1.000000e+00 : f32
    %361 = vector.broadcast %cst_60 : f32 to vector<2x1xf32>
    %362 = arith.subf %361, %339 : vector<2x1xf32>
    %363 = vector.broadcast %362 : vector<2x1xf32> to vector<2x32xf32>
    %364 = arith.mulf %363, %305 : vector<2x32xf32>
    %365 = arith.addf %360, %364 : vector<2x32xf32>
    %366 = vector.broadcast %339 : vector<2x1xf32> to vector<2x32xf32>
    %367 = arith.mulf %366, %356 : vector<2x32xf32>
    %cst_61 = arith.constant 1.000000e+00 : f32
    %368 = vector.broadcast %cst_61 : f32 to vector<2x1xf32>
    %369 = arith.subf %368, %339 : vector<2x1xf32>
    %370 = vector.broadcast %369 : vector<2x1xf32> to vector<2x32xf32>
    %371 = arith.mulf %370, %312 : vector<2x32xf32>
    %372 = arith.addf %367, %371 : vector<2x32xf32>
    %373 = vector.broadcast %339 : vector<2x1xf32> to vector<2x32xf32>
    %374 = arith.mulf %358, %373 : vector<2x32xf32>
    %c4_62 = arith.constant 4 : index
    %c32_63 = arith.constant 32 : index
    %375 = vector.load %arg11[%c4_62, %c32_63] : memref<16x64xf32, #tpu.memory_space<vmem>>, vector<2x32xf32>
    tpu.vector_store %arg11[%c4_62, %c32_63], %374 {strides = array<i32>} : memref<16x64xf32, #tpu.memory_space<vmem>>, vector<2x32xf32>,
    %376 = vector.extract_strided_slice %6 {offsets = [12, 0], sizes = [2, 1], strides = [1, 1]} : vector<16x1xf32> to vector<2x1xf32>
    %377 = vector.extract_strided_slice %5 {offsets = [12, 0], sizes = [2, 128], strides = [1, 1]} : vector<16x256xf32> to vector<2x128xf32>
    %cst_64 = arith.constant dense<0.000000e+00> : vector<2x128xf32>
    %378 = tpu.matmul %335, %7, %cst_64 {dimension_numbers = #tpu.dot_dimension_numbers<[1], [0], [0], [1], [0, 0, 1, 1], [], []>} : vector<2x32xf32>, vector<32x128xf32>, vector<2x128xf32> -> vector<2x128xf32>
    %379 = arith.addf %377, %378 : vector<2x128xf32>
    %380 = math.tanh %379 : vector<2x128xf32>
    %381 = arith.negf %379 : vector<2x128xf32>
    %382 = math.exp %381 : vector<2x128xf32>
    %cst_65 = arith.constant 1.000000e+00 : f32
    %383 = vector.broadcast %cst_65 : f32 to vector<2x128xf32>
    %384 = arith.addf %383, %382 : vector<2x128xf32>
    %385 = arith.divf %383, %384 : vector<2x128xf32>
    %386 = arith.select %14, %380, %385 : vector<2x128xi1>, vector<2x128xf32>
    %387 = vector.extract_strided_slice %386 {offsets = [0, 0], sizes = [2, 32], strides = [1, 1]} : vector<2x128xf32> to vector<2x32xf32>
    %388 = vector.extract_strided_slice %386 {offsets = [0, 32], sizes = [2, 32], strides = [1, 1]} : vector<2x128xf32> to vector<2x32xf32>
    %389 = vector.extract_strided_slice %386 {offsets = [0, 64], sizes = [2, 32], strides = [1, 1]} : vector<2x128xf32> to vector<2x32xf32>
    %390 = vector.extract_strided_slice %386 {offsets = [0, 96], sizes = [2, 32], strides = [1, 1]} : vector<2x128xf32> to vector<2x32xf32>
    %391 = arith.mulf %388, %333 : vector<2x32xf32>
    %392 = arith.mulf %387, %389 : vector<2x32xf32>
    %393 = arith.addf %391, %392 : vector<2x32xf32>
    %394 = math.tanh %393 : vector<2x32xf32>
    %395 = arith.mulf %390, %394 : vector<2x32xf32>
    %396 = vector.broadcast %376 : vector<2x1xf32> to vector<2x32xf32>
    %397 = arith.mulf %395, %396 : vector<2x32xf32>
    %c12_66 = arith.constant 12 : index
    %c0_67 = arith.constant 0 : index
    %398 = vector.load %arg11[%c12_66, %c0_67] : memref<16x64xf32, #tpu.memory_space<vmem>>, vector<2x32xf32>
    tpu.vector_store %arg11[%c12_66, %c0_67], %397 {strides = array<i32>} : memref<16x64xf32, #tpu.memory_space<vmem>>, vector<2x32xf32>,
    %399 = vector.extract_strided_slice %6 {offsets = [2, 0], sizes = [2, 1], strides = [1, 1]} : vector<16x1xf32> to vector<2x1xf32>
    %400 = vector.extract_strided_slice %5 {offsets = [2, 128], sizes = [2, 128], strides = [1, 1]} : vector<16x256xf32> to vector<2x128xf32>
    %cst_68 = arith.constant dense<0.000000e+00> : vector<2x128xf32>
    %401 = tpu.matmul %365, %8, %cst_68 {dimension_numbers = #tpu.dot_dimension_numbers<[1], [0], [0], [1], [0, 0, 1, 1], [], []>} : vector<2x32xf32>, vector<32x128xf32>, vector<2x128xf32> -> vector<2x128xf32>
    %402 = arith.addf %400, %401 : vector<2x128xf32>
    %403 = math.tanh %402 : vector<2x128xf32>
    %404 = arith.negf %402 : vector<2x128xf32>
    %405 = math.exp %404 : vector<2x128xf32>
    %cst_69 = arith.constant 1.000000e+00 : f32
    %406 = vector.broadcast %cst_69 : f32 to vector<2x128xf32>
    %407 = arith.addf %406, %405 : vector<2x128xf32>
    %408 = arith.divf %406, %407 : vector<2x128xf32>
    %409 = arith.select %14, %403, %408 : vector<2x128xi1>, vector<2x128xf32>
    %410 = vector.extract_strided_slice %409 {offsets = [0, 0], sizes = [2, 32], strides = [1, 1]} : vector<2x128xf32> to vector<2x32xf32>
    %411 = vector.extract_strided_slice %409 {offsets = [0, 32], sizes = [2, 32], strides = [1, 1]} : vector<2x128xf32> to vector<2x32xf32>
    %412 = vector.extract_strided_slice %409 {offsets = [0, 64], sizes = [2, 32], strides = [1, 1]} : vector<2x128xf32> to vector<2x32xf32>
    %413 = vector.extract_strided_slice %409 {offsets = [0, 96], sizes = [2, 32], strides = [1, 1]} : vector<2x128xf32> to vector<2x32xf32>
    %414 = arith.mulf %411, %372 : vector<2x32xf32>
    %415 = arith.mulf %410, %412 : vector<2x32xf32>
    %416 = arith.addf %414, %415 : vector<2x32xf32>
    %417 = math.tanh %416 : vector<2x32xf32>
    %418 = arith.mulf %413, %417 : vector<2x32xf32>
    %419 = vector.broadcast %399 : vector<2x1xf32> to vector<2x32xf32>
    %420 = arith.mulf %419, %418 : vector<2x32xf32>
    %cst_70 = arith.constant 1.000000e+00 : f32
    %421 = vector.broadcast %cst_70 : f32 to vector<2x1xf32>
    %422 = arith.subf %421, %399 : vector<2x1xf32>
    %423 = vector.broadcast %422 : vector<2x1xf32> to vector<2x32xf32>
    %424 = arith.mulf %423, %365 : vector<2x32xf32>
    %425 = arith.addf %420, %424 : vector<2x32xf32>
    %426 = vector.broadcast %399 : vector<2x1xf32> to vector<2x32xf32>
    %427 = arith.mulf %426, %416 : vector<2x32xf32>
    %cst_71 = arith.constant 1.000000e+00 : f32
    %428 = vector.broadcast %cst_71 : f32 to vector<2x1xf32>
    %429 = arith.subf %428, %399 : vector<2x1xf32>
    %430 = vector.broadcast %429 : vector<2x1xf32> to vector<2x32xf32>
    %431 = arith.mulf %430, %372 : vector<2x32xf32>
    %432 = arith.addf %427, %431 : vector<2x32xf32>
    %433 = vector.broadcast %399 : vector<2x1xf32> to vector<2x32xf32>
    %434 = arith.mulf %418, %433 : vector<2x32xf32>
    %c2_72 = arith.constant 2 : index
    %c32_73 = arith.constant 32 : index
    %435 = vector.load %arg11[%c2_72, %c32_73] : memref<16x64xf32, #tpu.memory_space<vmem>>, vector<2x32xf32>
    tpu.vector_store %arg11[%c2_72, %c32_73], %434 {strides = array<i32>} : memref<16x64xf32, #tpu.memory_space<vmem>>, vector<2x32xf32>,
    %436 = vector.extract_strided_slice %6 {offsets = [14, 0], sizes = [2, 1], strides = [1, 1]} : vector<16x1xf32> to vector<2x1xf32>
    %437 = vector.extract_strided_slice %5 {offsets = [14, 0], sizes = [2, 128], strides = [1, 1]} : vector<16x256xf32> to vector<2x128xf32>
    %cst_74 = arith.constant dense<0.000000e+00> : vector<2x128xf32>
    %438 = tpu.matmul %395, %7, %cst_74 {dimension_numbers = #tpu.dot_dimension_numbers<[1], [0], [0], [1], [0, 0, 1, 1], [], []>} : vector<2x32xf32>, vector<32x128xf32>, vector<2x128xf32> -> vector<2x128xf32>
    %439 = arith.addf %437, %438 : vector<2x128xf32>
    %440 = math.tanh %439 : vector<2x128xf32>
    %441 = arith.negf %439 : vector<2x128xf32>
    %442 = math.exp %441 : vector<2x128xf32>
    %cst_75 = arith.constant 1.000000e+00 : f32
    %443 = vector.broadcast %cst_75 : f32 to vector<2x128xf32>
    %444 = arith.addf %443, %442 : vector<2x128xf32>
    %445 = arith.divf %443, %444 : vector<2x128xf32>
    %446 = arith.select %14, %440, %445 : vector<2x128xi1>, vector<2x128xf32>
    %447 = vector.extract_strided_slice %446 {offsets = [0, 0], sizes = [2, 32], strides = [1, 1]} : vector<2x128xf32> to vector<2x32xf32>
    %448 = vector.extract_strided_slice %446 {offsets = [0, 32], sizes = [2, 32], strides = [1, 1]} : vector<2x128xf32> to vector<2x32xf32>
    %449 = vector.extract_strided_slice %446 {offsets = [0, 64], sizes = [2, 32], strides = [1, 1]} : vector<2x128xf32> to vector<2x32xf32>
    %450 = vector.extract_strided_slice %446 {offsets = [0, 96], sizes = [2, 32], strides = [1, 1]} : vector<2x128xf32> to vector<2x32xf32>
    %451 = arith.mulf %448, %393 : vector<2x32xf32>
    %452 = arith.mulf %447, %449 : vector<2x32xf32>
    %453 = arith.addf %451, %452 : vector<2x32xf32>
    %454 = math.tanh %453 : vector<2x32xf32>
    %455 = arith.mulf %450, %454 : vector<2x32xf32>
    %456 = vector.broadcast %436 : vector<2x1xf32> to vector<2x32xf32>
    %457 = arith.mulf %455, %456 : vector<2x32xf32>
    %c14_76 = arith.constant 14 : index
    %c0_77 = arith.constant 0 : index
    %458 = vector.load %arg11[%c14_76, %c0_77] : memref<16x64xf32, #tpu.memory_space<vmem>>, vector<2x32xf32>
    tpu.vector_store %arg11[%c14_76, %c0_77], %457 {strides = array<i32>} : memref<16x64xf32, #tpu.memory_space<vmem>>, vector<2x32xf32>,
    %459 = vector.extract_strided_slice %6 {offsets = [0, 0], sizes = [2, 1], strides = [1, 1]} : vector<16x1xf32> to vector<2x1xf32>
    %460 = vector.extract_strided_slice %5 {offsets = [0, 128], sizes = [2, 128], strides = [1, 1]} : vector<16x256xf32> to vector<2x128xf32>
    %cst_78 = arith.constant dense<0.000000e+00> : vector<2x128xf32>
    %461 = tpu.matmul %425, %8, %cst_78 {dimension_numbers = #tpu.dot_dimension_numbers<[1], [0], [0], [1], [0, 0, 1, 1], [], []>} : vector<2x32xf32>, vector<32x128xf32>, vector<2x128xf32> -> vector<2x128xf32>
    %462 = arith.addf %460, %461 : vector<2x128xf32>
    %463 = math.tanh %462 : vector<2x128xf32>
    %464 = arith.negf %462 : vector<2x128xf32>
    %465 = math.exp %464 : vector<2x128xf32>
    %cst_79 = arith.constant 1.000000e+00 : f32
    %466 = vector.broadcast %cst_79 : f32 to vector<2x128xf32>
    %467 = arith.addf %466, %465 : vector<2x128xf32>
    %468 = arith.divf %466, %467 : vector<2x128xf32>
    %469 = arith.select %14, %463, %468 : vector<2x128xi1>, vector<2x128xf32>
    %470 = vector.extract_strided_slice %469 {offsets = [0, 0], sizes = [2, 32], strides = [1, 1]} : vector<2x128xf32> to vector<2x32xf32>
    %471 = vector.extract_strided_slice %469 {offsets = [0, 32], sizes = [2, 32], strides = [1, 1]} : vector<2x128xf32> to vector<2x32xf32>
    %472 = vector.extract_strided_slice %469 {offsets = [0, 64], sizes = [2, 32], strides = [1, 1]} : vector<2x128xf32> to vector<2x32xf32>
    %473 = vector.extract_strided_slice %469 {offsets = [0, 96], sizes = [2, 32], strides = [1, 1]} : vector<2x128xf32> to vector<2x32xf32>
    %474 = arith.mulf %471, %432 : vector<2x32xf32>
    %475 = arith.mulf %470, %472 : vector<2x32xf32>
    %476 = arith.addf %474, %475 : vector<2x32xf32>
    %477 = math.tanh %476 : vector<2x32xf32>
    %478 = arith.mulf %473, %477 : vector<2x32xf32>
    %479 = vector.broadcast %459 : vector<2x1xf32> to vector<2x32xf32>
    %480 = arith.mulf %478, %479 : vector<2x32xf32>
    %c0_80 = arith.constant 0 : index
    %c32_81 = arith.constant 32 : index
    %481 = vector.load %arg11[%c0_80, %c32_81] : memref<16x64xf32, #tpu.memory_space<vmem>>, vector<2x32xf32>
    tpu.vector_store %arg11[%c0_80, %c32_81], %480 {strides = array<i32>} : memref<16x64xf32, #tpu.memory_space<vmem>>, vector<2x32xf32>,
    %c0_82 = arith.constant 0 : index
    %c0_83 = arith.constant 0 : index
    %482 = vector.load %arg11[%c0_82, %c0_83] : memref<16x64xf32, #tpu.memory_space<vmem>>, vector<16x64xf32>
    %c0_84 = arith.constant 0 : index
    %c0_85 = arith.constant 0 : index
    %483 = vector.load %arg8[%c0_84, %c0_85] : memref<64x8xf32, #tpu.memory_space<vmem>>, vector<64x8xf32>
    %cst_86 = arith.constant dense<0.000000e+00> : vector<16x8xf32>
    %484 = tpu.matmul %482, %483, %cst_86 {dimension_numbers = #tpu.dot_dimension_numbers<[1], [0], [0], [1], [0, 0, 1, 1], [], []>} : vector<16x64xf32>, vector<64x8xf32>, vector<16x8xf32> -> vector<16x8xf32>
    %c0_87 = arith.constant 0 : index
    %c0_88 = arith.constant 0 : index
    %485 = vector.load %arg9[%c0_87, %c0_88] : memref<1x8xf32, #tpu.memory_space<vmem>>, vector<1x8xf32>
    %486 = vector.broadcast %485 : vector<1x8xf32> to vector<16x8xf32>
    %487 = arith.addf %484, %486 : vector<16x8xf32>
    %cst_89 = arith.constant dense<0xFF800000> : vector<16xf32>
    %488 = vector.multi_reduction <maximumf>, %487, %cst_89 [1] : vector<16x8xf32> to vector<16xf32>
    %489 = vector.shape_cast %488 : vector<16xf32> to vector<16x1xf32>
    %490 = vector.broadcast %489 : vector<16x1xf32> to vector<16x8xf32>
    %491 = arith.subf %487, %490 : vector<16x8xf32>
    %492 = math.exp %491 : vector<16x8xf32>
    %cst_90 = arith.constant dense<0.000000e+00> : vector<16xf32>
    %493 = vector.multi_reduction <add>, %492, %cst_90 [1] : vector<16x8xf32> to vector<16xf32>
    %494 = vector.shape_cast %493 : vector<16xf32> to vector<16x1xf32>
    %495 = math.log %494 : vector<16x1xf32>
    %496 = arith.addf %489, %495 : vector<16x1xf32>
    %497 = tpu.iota {dimensions = array<i32: 1>} : vector<16x8xi32>
    %c0_91 = arith.constant 0 : index
    %c0_92 = arith.constant 0 : index
    %498 = vector.load %arg3[%c0_91, %c0_92] : memref<16x1xi32, #tpu.memory_space<vmem>>, vector<16x1xi32>
    %499 = vector.broadcast %498 : vector<16x1xi32> to vector<16x8xi32>
    %500 = arith.cmpi eq, %497, %499 : vector<16x8xi32>
    %501 = arith.extui %500 : vector<16x8xi1> to vector<16x8xi32>
    %502 = arith.sitofp %501 : vector<16x8xi32> to vector<16x8xf32>
    %503 = arith.mulf %502, %487 : vector<16x8xf32>
    %cst_93 = arith.constant dense<0.000000e+00> : vector<16xf32>
    %504 = vector.multi_reduction <add>, %503, %cst_93 [1] : vector<16x8xf32> to vector<16xf32>
    %505 = vector.shape_cast %504 : vector<16xf32> to vector<16x1xf32>
    %506 = arith.subf %496, %505 : vector<16x1xf32>
    %507 = arith.mulf %506, %6 : vector<16x1xf32>
    %508 = vector.shape_cast %507 : vector<16x1xf32> to vector<1x16x1xf32>
    %cst_94 = arith.constant dense<0.000000e+00> : vector<1xf32>
    %509 = vector.multi_reduction <add>, %508, %cst_94 [1, 2] : vector<1x16x1xf32> to vector<1xf32>
    %510 = vector.shape_cast %509 : vector<1xf32> to vector<1x1x1xf32>
    %511 = vector.extract %510[0, 0, 0] : f32 from vector<1x1x1xf32>
    %cst_95 = arith.constant 1.600000e+01 : f32
    %512 = arith.divf %511, %cst_95 : f32
    %513 = vector.broadcast %512 : f32 to vector<1x1xf32>
    %c0_96 = arith.constant 0 : index
    %c0_97 = arith.constant 0 : index
    %514 = vector.load %arg10[%c0_96, %c0_97] : memref<1x1xf32, #tpu.memory_space<vmem>>, vector<1x1xf32>
    tpu.vector_store %arg10[%c0_96, %c0_97], %513 {strides = array<i32>} : memref<1x1xf32, #tpu.memory_space<vmem>>, vector<1x1xf32>,
    return
  }
  func.func @transform_0(%arg0: i32) -> (i32, i32) {
    %c0_i32 = arith.constant 0 : i32
    %c0_i32_0 = arith.constant 0 : i32
    %c0_i32_1 = arith.constant 0 : i32
    return %c0_i32, %c0_i32_0 : i32, i32
  }
  func.func @transform_1(%arg0: i32) -> (i32, i32) {
    %c0_i32 = arith.constant 0 : i32
    %c0_i32_0 = arith.constant 0 : i32
    %c0_i32_1 = arith.constant 0 : i32
    return %c0_i32, %c0_i32_0 : i32, i32
  }
  func.func @transform_2(%arg0: i32) -> (i32, i32) {
    %c0_i32 = arith.constant 0 : i32
    %c0_i32_0 = arith.constant 0 : i32
    %c0_i32_1 = arith.constant 0 : i32
    return %c0_i32, %c0_i32_0 : i32, i32
  }
  func.func @transform_3(%arg0: i32) -> (i32, i32) {
    %c0_i32 = arith.constant 0 : i32
    %c0_i32_0 = arith.constant 0 : i32
    %c0_i32_1 = arith.constant 0 : i32
    return %c0_i32, %c0_i32_0 : i32, i32
  }
  func.func @transform_4(%arg0: i32) -> (i32, i32) {
    %c0_i32 = arith.constant 0 : i32
    %c0_i32_0 = arith.constant 0 : i32
    %c0_i32_1 = arith.constant 0 : i32
    return %c0_i32, %c0_i32_0 : i32, i32
  }
  func.func @transform_5(%arg0: i32) -> (i32, i32) {
    %c0_i32 = arith.constant 0 : i32
    %c0_i32_0 = arith.constant 0 : i32
    %c0_i32_1 = arith.constant 0 : i32
    return %c0_i32, %c0_i32_0 : i32, i32
  }
  func.func @transform_6(%arg0: i32) -> (i32, i32) {
    %c0_i32 = arith.constant 0 : i32
    %c0_i32_0 = arith.constant 0 : i32
    %c0_i32_1 = arith.constant 0 : i32
    return %c0_i32, %c0_i32_0 : i32, i32
  }
  func.func @transform_7(%arg0: i32) -> (i32, i32) {
    %c0_i32 = arith.constant 0 : i32
    %c0_i32_0 = arith.constant 0 : i32
    %c0_i32_1 = arith.constant 0 : i32
    return %c0_i32, %c0_i32_0 : i32, i32
  }
  func.func @transform_8(%arg0: i32) -> (i32, i32) {
    %c0_i32 = arith.constant 0 : i32
    %c0_i32_0 = arith.constant 0 : i32
    %c0_i32_1 = arith.constant 0 : i32
    return %c0_i32, %c0_i32_0 : i32, i32
  }
  func.func @transform_9(%arg0: i32) -> (i32, i32) {
    %c0_i32 = arith.constant 0 : i32
    %c0_i32_0 = arith.constant 0 : i32
    %c0_i32_1 = arith.constant 0 : i32
    return %c0_i32, %c0_i32_0 : i32, i32
  }
}

</mosaic_0001>

<bundles_post_ra>
// kernel: tpu_custom_call.1
= control target key start
LH: loop header
LB: loop body
LE: loop exit
PB: predicated region body
PF: predicated region fallthrough
CT: control target
= control target key end

     0   :  { %14 = vsyncpa [#allocation4], 0  ;;  %s3653_s0 = inlined_call_operand.hbm [shape: f32[16,32], index: 0, kind: input, shape index: {}]   ;;  %s3654_s1 = inlined_call_operand.vmem [shape: f32[16,1], index: 1, kind: input, shape index: {}]   ;;  %s3655_s2 = inlined_call_operand.vmem [shape: s32[16,1], index: 2, kind: input, shape index: {}]   ;;  %s3656_s3 = inlined_call_operand.vmem [shape: f32[32,256], index: 3, kind: input, shape index: {}]   ;;  %s3657_s4 = inlined_call_operand.hbm [shape: f32[1,256], index: 4, kind: input, shape index: {}]   ;;  %s3658_s5 = inlined_call_operand.vmem [shape: f32[32,128], index: 5, kind: input, shape index: {}]   ;;  %s3659_s6 = inlined_call_operand.vmem [shape: f32[32,128], index: 6, kind: input, shape index: {}]   ;;  %s3660_s7 = inlined_call_operand.vmem [shape: f32[64,8], index: 7, kind: input, shape index: {}]   ;;  %s3661_s8 = inlined_call_operand.vmem [shape: f32[1,8], index: 8, kind: input, shape index: {}]   ;;  %s3662_s9 = inlined_call_operand.hbm [shape: f32[1,1], index: 9, kind: output, shape index: {}]  }
   0x1   :  { %15 = vsyncpa [#allocation7], 0 }
   0x2   :  { %16 = vsyncpa [#allocation5], 0  ;;  %s2977_s30 = smov [#allocation3]   ;;  %s2905_s13 = scalar_lea.hbm %s3653_s0, 256 }
   0x3   :  { %s22_s10 = sshll.u32 %s2977_s30, 4  ;;  %p2906_p0 = scmp.ne.s32.totalorder %s3653_s0, %s2905_s13  ;;  %s23_s10 = int_to_ptr.vmem [resolvable:$true] %s22_s10 }
   0x4   :  { %p2909_p1 = scmp.lt.u32.totalorder %s2905_s13, %s3653_s0 }
   0x6   :  { %p2911_p2 = pnand %p2909_p1, %p2906_p0 }
   0x8   :  { %2914 = shalt.err (!%p2911_p2)
}
   0x9   :  { %s2915_s18 = scalar_lea.vmem %s23_s10, 256  ;;  %p2920_p4 = scmp.lt.s32.totalorder %s23_s10, %s23_s10 }
   0xa   :  { %p2916_p3 = scmp.ne.s32.totalorder %s23_s10, %s2915_s18  ;;  %p2921_p5 = scmp.lt.s32.totalorder %s2915_s18, %s2915_s18 }
   0xc   :  { %p2922_p6 = por %p2921_p5, %p2920_p4 }
   0xe   :  { %p2923_p7 = pnand %p2922_p6, %p2916_p3 }
  0x10   :  { %2926 = shalt.err (!%p2923_p7)
}
  0x11   :  { %s2978_s19 = smov 128   ;;  %s2979_s20 = smov 8  }
  0x12   :  { %28 = dma.hbm_to_vmem [thread:$0]  %s3653_s0, 256, %s23_s10, [#allocation4], %s2978_s19, %s2978_s19, %s2979_s20  }
  0x13   :  { %s2980_s23 = smov [#allocation6]   ;;  %s2927_s27 = scalar_lea.hbm %s3657_s4, 32 }
  0x14   :  { %s41_s24 = sshll.u32 %s2980_s23, 4  ;;  %p2928_p8 = scmp.ne.s32.totalorder %s3657_s4, %s2927_s27  ;;  %s42_s24 = int_to_ptr.vmem [resolvable:$true] %s41_s24 }
  0x15   :  { %p2931_p9 = scmp.lt.u32.totalorder %s2927_s27, %s3657_s4 }
  0x17   :  { %p2933_p10 = pnand %p2931_p9, %p2928_p8 }
  0x19   :  { %2936 = shalt.err (!%p2933_p10)
}
  0x1a   :  { %s2937_s12 = scalar_lea.vmem %s42_s24, 32  ;;  %p2942_p12 = scmp.lt.s32.totalorder %s42_s24, %s42_s24 }
  0x1b   :  { %p2938_p11 = scmp.ne.s32.totalorder %s42_s24, %s2937_s12  ;;  %p2943_p13 = scmp.lt.s32.totalorder %s2937_s12, %s2937_s12 }
  0x1d   :  { %p2944_p0 = por %p2943_p13, %p2942_p12 }
  0x1f   :  { %p2945_p1 = pnand %p2944_p0, %p2938_p11 }
  0x21   :  { %2948 = shalt.err (!%p2945_p1)
}
  0x22   :  { %44 = dma.hbm_to_vmem [thread:$0]  %s3657_s4, 32, %s42_s24, [#allocation7]  }
  0x23   :  { %2971 = dma.done.wait [#allocation4], 256  }
  0x24   :  { %2972 = vsyncadd [#allocation4], 4294967040 }
  0x25   :  { %2973 = dma.done.wait [#allocation7], 32  }
  0x26   :  { %2974 = vsyncadd [#allocation7], 4294967264  ;;  %v2981_v0 = vmov 0.0|0.0   ;;  %v2982_v1 = vmov 0.0   ;;  %vm2983_vm0 = vmmov 0   ;;  %v62_v2 = vld [vmem:[%s3656_s3 + $0x8] sm:$0xff]  ;;  %v71_v29 = vlaneseq }
  0x27   :  { %2640 = vmatprep.subr.bf16.mxu1 %v2981_v0  ;;  %152 = vmatprep.mubr.f32.mxu0 %v2982_v1  ;;  %v64_v3 = vld [vmem:[%s3656_s3 + $0x18] sm:$0xff]  ;;  %v61_v4 = vld [vmem:[%s3656_s3] sm:$0xff]  ;;  %v63_v6 = vld [vmem:[%s3656_s3 + $0x10] sm:$0xff]  ;;  %vm81_vm1 = vcmask 261120   ;;  %v2984_v28 = vmov 0   ;;  %s2986_s21 = smov 32  }
  0x28   :  { %2445 = vmatprep.mubr.msk.f32.mxu1 %vm2983_vm0, %v2982_v1  ;;  %v2632_v5 = vpack.c.bf16 %v64_v3, %v62_v2  ;;  %v167_v7 = vld [vmem:[%s3658_s5] sm:$0xff]  ;;  %v168_v8 = vld [vmem:[%s3658_s5 + $0x8] sm:$0xff]  ;;  %v2634_v9 = vpack.c.bf16 %v63_v6, %v61_v4  ;;  %v68_v12 = vld [vmem:[%s3656_s3 + $0x38] sm:$0xff]  ;;  %2766 = vset.pattern.permute.xlu0 %v2984_v28  ;;  %v72_v30 = vshrl.u32 %v71_v29, 7  ;;  %v3161_v57 = vand.u32 127, %v71_v29  ;;  %s2987_s22 = smov 96  }
  0x29   :  { %v3085_v10 = vpack.c.bf16 %v168_v8, %v167_v7  ;;  %v66_v11 = vld [vmem:[%s3656_s3 + $0x28] sm:$0xff]  ;;  %v65_v13 = vld [vmem:[%s3656_s3 + $0x20] sm:$0xff]  ;;  %v67_v15 = vld [vmem:[%s3656_s3 + $0x30] sm:$0xff]  ;;  %2767 = vset.pattern.permute.xlu1 %v2984_v28  ;;  %vm524_vm5 = vcmask 257026   ;;  %vm289_vm6 = vcmask 254976   ;;  %vm1024_vm7 = vcmask 261126  }
  0x2a   :  { %2633 = vmatprep.subr.bf16.mxu0 %v2632_v5  ;;  %v2636_v14 = vpack.c.bf16 %v68_v12, %v66_v11  ;;  %v169_v16 = vld [vmem:[%s3658_s5 + $0x10] sm:$0xff]  ;;  %v170_v17 = vld [vmem:[%s3658_s5 + $0x18] sm:$0xff]  ;;  %v2638_v18 = vpack.c.bf16 %v67_v15, %v65_v13  ;;  %v171_v20 = vld [vmem:[%s3659_s6] sm:$0xff]  ;;  %v73_v31 = vsub.s32 0, %v72_v30  ;;  %v77_v33 = vsub.s32 1, %v72_v30  ;;  %s2988_s20 = smov [#allocation8]  }
  0x2b   :  { %2635 = vmatpush1.bf16.msra.mxu0 %v2634_v9  ;;  %2642 = vmatpush3.bf16.msra.mxu1 %v3085_v10  ;;  %v3106_v19 = vpack.c.bf16 %v170_v17, %v169_v16  ;;  %v172_v21 = vld [vmem:[%s3659_s6 + $0x8] sm:$0xff]  ;;  %v59_v22 = vld [vmem:[#allocation3] sm:$0xff]  ;;  %v174_v25 = vld [vmem:[%s3659_s6 + $0x18] sm:$0xff]  ;;  %vm177_vm2 = vcmp.ge.s32.totalorder %v3161_v57, 64  ;;  %vm178_vm3 = vcmp.lt.s32.totalorder %v3161_v57, 96  ;;  %vm774_vm8 = vcmask 259076  }
  0x2c   :  { %2637 = vmatprep.subr.bf16.mxu0 %v2636_v14  ;;  %2643 = vmatprep.subr.bf16.mxu1 %v2981_v0  ;;  %v3116_v23 = vpack.c.bf16 %v172_v21, %v171_v20  ;;  %v173_v24 = vld [vmem:[%s3659_s6 + $0x10] sm:$0xff]  ;;  %v60_v26 = vld [vmem:[#allocation3 + $0x8] sm:$0xff]  ;;  %v69_v32 = vld [vmem:[#allocation6] sm:$0x3]  ;;  %s2985_s6 = smov 64   ;;  %vm659_vm9 = vcmask 521476  }
  0x2d   :  { %v3130_v27 = vpack.c.bf16 %v174_v25, %v173_v24  ;;  %v74_v34 = vrot.slane %v69_v32, %v73_v31  ;;  %v78_v35 = vrot.slane %v69_v32, %v77_v33  ;;  %vm3165_vm4 = vmand %vm177_vm2, %vm178_vm3  ;;  %v166_v3 = vld [vmem:[%s3654_s1 + $0x8] sm:$0xff]  ;;  %vm410_vm10 = vcmask 523526  }
  0x2e   :  { %v396_v8 = vsub.f32 1.0, %v166_v3  ;;  %vm1153_vm11 = vcmask 517376   ;;  %vm909_vm12 = vcmask 519426   ;;  %vm2142_vm13 = vcmask 523264  }
  0x2f   :  { %2639 = vmatpush1.bf16.msra.mxu0 %v2638_v18  ;;  %2645 = vmatpush3.bf16.msra.mxu1 %v3106_v19  ;;  %vm2224_vm14 = vcmask 64512   ;;  %vm2292_vm2 = vcmask 0  }
  0x30   :  { %2646 = vmatprep.subr.bf16.mxu0 %v2981_v0  ;;  %2652 = vmatprep.subr.bf16.mxu1 %v2981_v0 }
  0x32   :  { %2310 = vmatmul.mubr.msk.f32.vlgmr.msra.gmra.mrb[0].mxu0 %vm81_vm1, %v59_v22  ;;  %2446 = vmatmul.mubr.f32.vlgmr.msra.gmra.mrb[0].mxu1 %v2982_v1 }
  0x33   :  { %2648 = vmatpush3.bf16.msra.mxu0 %v3116_v23  ;;  %158 = vmatprep.mubr.f32.mxu0 %v2982_v1 }
  0x34   :  { %2649 = vmatprep.subr.bf16.mxu0 %v2981_v0  ;;  %2654 = vmatpush3.bf16.msra.mxu1 %v3085_v10 }
  0x35   :  { %2655 = vmatprep.subr.bf16.mxu1 %v2981_v0  ;;  %2467 = vmatprep.mubr.msk.f32.mxu1 %vm2983_vm0, %v2982_v1 }
  0x36   :  { %2311 = vmatmul.mubr.msk.f32.gmra.mrb[2].mxu0 %vm81_vm1, %v60_v26 }
  0x37   :  { %2651 = vmatpush3.bf16.msra.mxu0 %v3130_v27  ;;  %2456 = vmatprep.mubr.msk.f32.mxu0 %vm2983_vm0, %v2982_v1 }
  0x38   :  { %2658 = vmatprep.subr.bf16.mxu0 %v2981_v0  ;;  %2657 = vmatpush3.bf16.msra.mxu1 %v3106_v19 }
  0x39   :  { %2664 = vmatprep.subr.bf16.mxu1 %v2981_v0 }
  0x3a   :  { %2457 = vmatmul.mubr.f32.vlgmr.msra.gmra.mrb[4].mxu0 %v2982_v1 }
  0x3b   :  { %2660 = vmatpush3.bf16.msra.mxu0 %v3116_v23  ;;  %2478 = vmatprep.mubr.msk.f32.mxu0 %vm2983_vm0, %v2982_v1 }
  0x3c   :  { %2661 = vmatprep.subr.bf16.mxu0 %v2981_v0 }
  0x3f   :  { %2663 = vmatpush3.bf16.msra.mxu0 %v3130_v27 }
  0x40   :  { %2670 = vmatprep.subr.bf16.mxu0 %v2981_v0 }
 0x105   :  { %v154_v36 = vpop.f32.mrb[0].mxu0  ;;  %v249_v37 = vpop.f32.mrb[0].mxu1 }
 0x106   :  { %v3151_v38 = vadd.f32 %v154_v36, %v74_v34  ;;  %v156_v39 = vpop.f32.mrb[1].mxu0  ;;  %v2447_v40 = vpop.f32.mrb[1].mxu1 }
 0x107   :  { %v3153_v41 = vadd.f32 %v156_v39, %v78_v35 }
 0x108   :  { %v253_v43 = vadd.f32 %v249_v37, %v3151_v38 }
 0x109   :  { %v160_v42 = vpop.f32.mrb[2].mxu0 }
 0x10a   :  { %v3156_v44 = vadd.f32 %v160_v42, %v74_v34  ;;  %v162_v45 = vpop.f32.mrb[3].mxu0  ;;  %v2312_v47 = vmul.f32 -1.442695, %v253_v43 }
 0x10b   :  { %v3158_v48 = vadd.f32 %v162_v45, %v78_v35 }
 0x10c   :  { %2768 = vpow2.f32 %v2312_v47 }
 0x10d   :  { %v357_v46 = vpop.f32.mrb[4].mxu0 }
 0x10e   :  { %v362_v49 = vrot.slane %v357_v46, 2  ;;  %v2458_v50 = vpop.f32.mrb[5].mxu0 }
 0x110   :  { %v364_v51 = vadd.f32 %v362_v49, %v3158_v48 }
 0x112   :  { %v2313_v52 = vmul.f32 -1.442695, %v364_v51 }
 0x114   :  { %2770 = vpow2.f32 %v2313_v52 }
 0x115   :  { %2772 = vtanh.f32 %v364_v51 }
 0x116   :  { %v2769_v53 = vpop.eup %2768 }
 0x117   :  { %v258_v55 = vadd.f32 1.0, %v2769_v53 }
 0x11e   :  { %v2771_v54 = vpop.eup %2770 }
 0x11f   :  { %v369_v56 = vadd.f32 1.0, %v2771_v54  ;;  %v2773_v58 = vpop.eup %2772 }
 0x121   :  { %2774 = vrcp.f32 %v369_v56 }
 0x122   :  { %2776 = vrcp.f32 %v258_v55 }
 0x123   :  { %2778 = vtanh.f32 %v253_v43 }
 0x12b   :  { %v2775_v59 = vpop.eup %2774 }
 0x12c   :  { %v372_v61 = vsel %vm3165_vm4, %v2773_v58, %v2775_v59  ;;  %v2777_v62 = vpop.eup %2776 }
 0x12d   :  { %375 = vrot.lane.b32.xlu0 %v372_v61, %s2985_s6  ;;  %v2779_v63 = vpop.eup %2778  ;;  %v373_v9 = vmul.f32 0.0, %v372_v61 }
 0x12e   :  { %v261_v2 = vsel %vm3165_vm4, %v2779_v63, %v2777_v62 }
 0x12f   :  { %v262_v13 = vmul.f32 0.0, %v261_v2 }
 0x131   :  { %264 = vrot.lane.b32.xlu0 %v261_v2, %s2985_s6 }
 0x135   :  { %392 = vperm.xlu0 %2766, %v166_v3  }
 0x19f   :  { %v376_v4 = vpop.permute.xlu0 %375 }
 0x1a0   :  { %v378_v5 = vmul.f32 %v376_v4, %v372_v61 }
 0x1a2   :  { %380 = vrot.lane.b32.xlu1 %v378_v5, %s2986_s21 }
 0x1a3   :  { %v265_v6 = vpop.permute.xlu0 %264 }
 0x1a4   :  { %v267_v7 = vmul.f32 %v265_v6, %v261_v2 }
 0x1a6   :  { %269 = vrot.lane.b32.xlu1 %v267_v7, %s2986_s21 }
 0x1aa   :  { %399 = vperm.xlu1 %2767, %v396_v8  }
 0x1b4   :  { %v3190_v20 = vpop.permute.xlu0 %392 }
 0x214   :  { %v381_v11 = vpop.permute.xlu1 %380 }
 0x215   :  { %v3180_v12 = vadd.f32 %v381_v11, %v373_v9 }
 0x217   :  { %2780 = vtanh.f32 %v3180_v12  ;;  %v404_v4 = vmul.f32 %v3190_v20, %v3180_v12 }
 0x218   :  { %v270_v14 = vpop.permute.xlu1 %269 }
 0x219   :  { %v3183_v15 = vadd.f32 %v270_v14, %v262_v13 }
 0x21b   :  { %2782 = vtanh.f32 %v3183_v15  ;;  %v500_v9 = vrot.slane %v3183_v15, 6 }
 0x221   :  { %v2781_v16 = vpop.eup %2780 }
 0x222   :  { %386 = vrot.lane.b32.xlu1 %v2781_v16, %s2985_s6 }
 0x225   :  { %v2783_v17 = vpop.eup %2782 }
 0x226   :  { %275 = vrot.lane.b32.xlu0 %v2783_v17, %s2985_s6 }
 0x229   :  { %v3188_v18 = vpop.permute.xlu1 %399 }
 0x22a   :  { %v3193_v24 = vmul.f32 0.0, %v3188_v18 }
 0x22c   :  { %v405_v5 = vadd.f32 %v404_v4, %v3193_v24 }
 0x22e   :  { %v615_v6 = vrot.slane %v405_v5, 2 }
 0x294   :  { %v387_v21 = vpop.permute.xlu1 %386 }
 0x295   :  { %v389_v22 = vmul.f32 %v387_v21, %v372_v61 }
 0x297   :  { %v3196_v25 = vmul.f32 %v3190_v20, %v389_v22 }
 0x298   :  { %v276_v26 = vpop.permute.xlu0 %275 }
 0x299   :  { %v403_v28 = vadd.f32 %v3193_v24, %v3196_v25  ;;  %v3200_v29 = vmul.f32 %v276_v26, %v261_v2 }
 0x29b   :  { %413 = vrot.lane.b32.xlu0 %v3200_v29, %s2986_s21  ;;  %v527_v30 = vrot.slane %v403_v28, 6  ;;  %v635_v58 = vrot.slane %v403_v28, 2 }
 0x29d   :  { %528 = vrot.lane.b32.xlu1 %v527_v30, %s2986_s21 }
 0x30d   :  { %v414_v31 = vpop.permute.xlu0 %413 }
 0x30e   :  { %2468 = vmatmul.mubr.msk.f32.vlgmr.msra.gmra.mrb[2].mxu1 %vm81_vm1, %v414_v31 }
 0x30f   :  { %v529_v32 = vpop.permute.xlu1 %528  ;;  %2666 = vmatpush3.bf16.msra.mxu1 %v3085_v10  ;;  %2489 = vmatprep.mubr.msk.f32.mxu1 %vm2983_vm0, %v2982_v1 }
 0x310   :  { %2479 = vmatmul.mubr.msk.f32.vlgmr.msra.gmra.mrb[6].mxu0 %vm81_vm1, %v529_v32  ;;  %2667 = vmatprep.subr.bf16.mxu1 %v2981_v0 }
 0x311   :  { %2672 = vmatpush3.bf16.msra.mxu0 %v3116_v23  ;;  %2500 = vmatprep.mubr.msk.f32.mxu0 %vm2983_vm0, %v2982_v1 }
 0x312   :  { %2673 = vmatprep.subr.bf16.mxu0 %v2981_v0 }
 0x313   :  { %2669 = vmatpush3.bf16.msra.mxu1 %v3106_v19 }
 0x314   :  { %2676 = vmatprep.subr.bf16.mxu1 %v2981_v0 }
 0x315   :  { %2675 = vmatpush3.bf16.msra.mxu0 %v3130_v27 }
 0x316   :  { %2682 = vmatprep.subr.bf16.mxu0 %v2981_v0 }
 0x3e1   :  { %v483_v33 = vpop.f32.mrb[2].mxu1 }
 0x3e2   :  { %v488_v34 = vrot.slane %v483_v33, 6  ;;  %v2469_v35 = vpop.f32.mrb[3].mxu1 }
 0x3e3   :  { %v598_v36 = vpop.f32.mrb[6].mxu0 }
 0x3e4   :  { %v490_v37 = vadd.f32 %v488_v34, %v3151_v38  ;;  %v603_v39 = vrot.slane %v598_v36, 4  ;;  %v2480_v40 = vpop.f32.mrb[7].mxu0 }
 0x3e6   :  { %v2315_v42 = vmul.f32 -1.442695, %v490_v37  ;;  %v605_v43 = vadd.f32 %v603_v39, %v3158_v48 }
 0x3e8   :  { %2784 = vpow2.f32 %v2315_v42  ;;  %v2317_v45 = vmul.f32 -1.442695, %v605_v43 }
 0x3ea   :  { %2786 = vpow2.f32 %v2317_v45 }
 0x3eb   :  { %2788 = vtanh.f32 %v490_v37 }
 0x3f2   :  { %v2785_v46 = vpop.eup %2784 }
 0x3f3   :  { %v495_v47 = vadd.f32 1.0, %v2785_v46 }
 0x3f4   :  { %v2787_v49 = vpop.eup %2786 }
 0x3f5   :  { %2790 = vrcp.f32 %v495_v47  ;;  %v610_v50 = vadd.f32 1.0, %v2787_v49  ;;  %v2789_v51 = vpop.eup %2788 }
 0x3f6   :  { %2792 = vtanh.f32 %v605_v43 }
 0x3f7   :  { %2794 = vrcp.f32 %v610_v50 }
 0x3ff   :  { %v2791_v52 = vpop.eup %2790 }
 0x400   :  { %v2793_v53 = vpop.eup %2792  ;;  %v498_v54 = vsel %vm3165_vm4, %v2789_v51, %v2791_v52 }
 0x401   :  { %v2795_v55 = vpop.eup %2794  ;;  %504 = vrot.lane.b32.xlu0 %v498_v54, %s2985_s6  ;;  %v502_v13 = vmul.f32 %v500_v9, %v498_v54 }
 0x402   :  { %v613_v56 = vsel %vm3165_vm4, %v2793_v53, %v2795_v55 }
 0x403   :  { %619 = vrot.lane.b32.xlu1 %v613_v56, %s2985_s6  ;;  %v617_v7 = vmul.f32 %v615_v6, %v613_v56 }
 0x405   :  { %636 = vrot.lane.b32.xlu0 %v635_v58, %s2986_s21 }
 0x473   :  { %v505_v59 = vpop.permute.xlu0 %504 }
 0x474   :  { %v507_v63 = vmul.f32 %v505_v59, %v498_v54 }
 0x475   :  { %v620_v61 = vpop.permute.xlu1 %619 }
 0x476   :  { %v622_v62 = vmul.f32 %v620_v61, %v613_v56 }
 0x477   :  { %v637_v2 = vpop.permute.xlu0 %636 }
 0x478   :  { %624 = vrot.lane.b32.xlu1 %v622_v62, %s2986_s21  ;;  %v639_v3 = vmul.f32 %v637_v2, %v3188_v18 }
 0x47c   :  { %509 = vrot.lane.b32.xlu1 %v507_v63, %s2986_s21 }
 0x480   :  { %641 = vrot.lane.b32.xlu1 %v639_v3, %s2987_s22 }
 0x4ea   :  { %v625_v8 = vpop.permute.xlu1 %624 }
 0x4eb   :  { %v3236_v11 = vadd.f32 %v625_v8, %v617_v7 }
 0x4ed   :  { %2796 = vtanh.f32 %v3236_v11  ;;  %v645_v5 = vmul.f32 %v3236_v11, %v3190_v20 }
 0x4ee   :  { %v510_v14 = vpop.permute.xlu1 %509 }
 0x4ef   :  { %v3239_v16 = vadd.f32 %v510_v14, %v502_v13 }
 0x4f1   :  { %2798 = vtanh.f32 %v3239_v16 }
 0x4f2   :  { %v642_v24 = vpop.permute.xlu1 %641 }
 0x4f7   :  { %v2797_v17 = vpop.eup %2796 }
 0x4f8   :  { %630 = vrot.lane.b32.xlu0 %v2797_v17, %s2985_s6 }
 0x4fb   :  { %v2799_v12 = vpop.eup %2798 }
 0x4fc   :  { %515 = vrot.lane.b32.xlu0 %v2799_v12, %s2985_s6 }
 0x56a   :  { %v631_v21 = vpop.permute.xlu0 %630 }
 0x56b   :  { %v633_v22 = vmul.f32 %v631_v21, %v613_v56  ;;  %v750_v21 = vrot.slane %v3239_v16, 6 }
 0x56d   :  { %v3245_v15 = vmul.f32 %v633_v22, %v3190_v20 }
 0x56e   :  { %v516_v26 = vpop.permute.xlu0 %515 }
 0x56f   :  { %v644_v28 = vadd.f32 %v642_v24, %v3245_v15  ;;  %v3248_v30 = vmul.f32 %v516_v26, %v498_v54 }
 0x571   :  { %v662_v31 = vrot.slane %v3248_v30, 2  ;;  %v777_v32 = vrot.slane %v644_v28, 4  ;;  %v885_v63 = vrot.slane %v644_v28, 2 }
 0x573   :  { %778 = vrot.lane.b32.xlu1 %v777_v32, %s2986_s21  ;;  %663 = vrot.lane.b32.xlu0 %v662_v31, %s2986_s21 }
 0x577   :  { %646 = vrot.lane.b32.xlu1 %v615_v6, %s2987_s22 }
 0x5e5   :  { %v779_v33 = vpop.permute.xlu1 %778  ;;  %v664_v34 = vpop.permute.xlu0 %663 }
 0x5e6   :  { %2490 = vmatmul.mubr.msk.f32.vlgmr.msra.gmra.mrb[4].mxu1 %vm81_vm1, %v664_v34  ;;  %2501 = vmatmul.mubr.msk.f32.vlgmr.msra.gmra.mrb[8].mxu0 %vm81_vm1, %v779_v33 }
 0x5e7   :  { %2678 = vmatpush3.bf16.msra.mxu1 %v3085_v10  ;;  %2684 = vmatpush3.bf16.msra.mxu0 %v3116_v23 }
 0x5e8   :  { %2679 = vmatprep.subr.bf16.mxu1 %v2981_v0  ;;  %2685 = vmatprep.subr.bf16.mxu0 %v2981_v0 }
 0x5e9   :  { %2511 = vmatprep.mubr.msk.f32.mxu1 %vm2983_vm0, %v2982_v1  ;;  %2522 = vmatprep.mubr.msk.f32.mxu0 %vm2983_vm0, %v2982_v1  ;;  %v647_v59 = vpop.permute.xlu1 %646 }
 0x5ea   :  { %v649_v62 = vmul.f32 %v647_v59, %v3188_v18 }
 0x5eb   :  { %2681 = vmatpush3.bf16.msra.mxu1 %v3106_v19  ;;  %2687 = vmatpush3.bf16.msra.mxu0 %v3130_v27 }
 0x5ec   :  { %2694 = vmatprep.subr.bf16.mxu0 %v2981_v0  ;;  %2688 = vmatprep.subr.bf16.mxu1 %v2981_v0 }
 0x6b9   :  { %v733_v35 = vpop.f32.mrb[4].mxu1  ;;  %v848_v36 = vpop.f32.mrb[8].mxu0 }
 0x6ba   :  { %v738_v37 = vrot.slane %v733_v35, 4  ;;  %v853_v39 = vrot.slane %v848_v36, 6  ;;  %v2491_v40 = vpop.f32.mrb[5].mxu1  ;;  %v2502_v42 = vpop.f32.mrb[9].mxu0 }
 0x6bc   :  { %v740_v43 = vadd.f32 %v738_v37, %v3151_v38  ;;  %v855_v45 = vadd.f32 %v853_v39, %v3158_v48 }
 0x6be   :  { %v2319_v46 = vmul.f32 -1.442695, %v740_v43  ;;  %v2321_v47 = vmul.f32 -1.442695, %v855_v45 }
 0x6c0   :  { %2800 = vpow2.f32 %v2319_v46 }
 0x6c1   :  { %2802 = vpow2.f32 %v2321_v47 }
 0x6c2   :  { %2804 = vtanh.f32 %v740_v43 }
 0x6c3   :  { %2806 = vtanh.f32 %v855_v45 }
 0x6ca   :  { %v2801_v49 = vpop.eup %2800 }
 0x6cb   :  { %v2803_v50 = vpop.eup %2802  ;;  %v745_v51 = vadd.f32 1.0, %v2801_v49 }
 0x6cc   :  { %v860_v52 = vadd.f32 1.0, %v2803_v50  ;;  %v2805_v53 = vpop.eup %2804 }
 0x6cd   :  { %2808 = vrcp.f32 %v745_v51  ;;  %v2807_v54 = vpop.eup %2806 }
 0x6ce   :  { %2810 = vrcp.f32 %v860_v52 }
 0x6d7   :  { %v2809_v55 = vpop.eup %2808 }
 0x6d8   :  { %v2811_v56 = vpop.eup %2810  ;;  %v748_v58 = vsel %vm3165_vm4, %v2805_v53, %v2809_v55 }
 0x6d9   :  { %v863_v61 = vsel %vm3165_vm4, %v2807_v54, %v2811_v56  ;;  %754 = vrot.lane.b32.xlu1 %v748_v58, %s2985_s6  ;;  %v752_v11 = vmul.f32 %v750_v21, %v748_v58 }
 0x6da   :  { %869 = vrot.lane.b32.xlu0 %v863_v61, %s2985_s6 }
 0x6de   :  { %651 = vrot.lane.b32.xlu0 %v649_v62, %s2986_s21 }
 0x6e2   :  { %886 = vrot.lane.b32.xlu0 %v885_v63, %s2986_s21 }
 0x74b   :  { %v755_v4 = vpop.permute.xlu1 %754 }
 0x74c   :  { %v870_v2 = vpop.permute.xlu0 %869  ;;  %v757_v7 = vmul.f32 %v755_v4, %v748_v58 }
 0x74d   :  { %v872_v3 = vmul.f32 %v870_v2, %v863_v61 }
 0x74f   :  { %874 = vrot.lane.b32.xlu1 %v872_v3, %s2986_s21 }
 0x750   :  { %v652_v6 = vpop.permute.xlu0 %651 }
 0x751   :  { %v654_v8 = vadd.f32 %v652_v6, %v645_v5 }
 0x753   :  { %759 = vrot.lane.b32.xlu1 %v757_v7, %s2986_s21  ;;  %v865_v14 = vrot.slane %v654_v8, 2 }
 0x754   :  { %v887_v9 = vpop.permute.xlu0 %886 }
 0x755   :  { %v889_v13 = vmul.f32 %v887_v9, %v3188_v18  ;;  %v867_v17 = vmul.f32 %v865_v14, %v863_v61 }
 0x757   :  { %891 = vrot.lane.b32.xlu1 %v889_v13, %s2987_s22 }
 0x7c1   :  { %v875_v12 = vpop.permute.xlu1 %874 }
 0x7c2   :  { %v3286_v22 = vadd.f32 %v875_v12, %v867_v17 }
 0x7c4   :  { %2812 = vtanh.f32 %v3286_v22 }
 0x7c5   :  { %v760_v24 = vpop.permute.xlu1 %759 }
 0x7c6   :  { %v3289_v26 = vadd.f32 %v760_v24, %v752_v11 }
 0x7c8   :  { %2814 = vtanh.f32 %v3289_v26  ;;  %v1000_v21 = vrot.slane %v3289_v26, 6 }
 0x7c9   :  { %v892_v34 = vpop.permute.xlu1 %891 }
 0x7ce   :  { %v2813_v28 = vpop.eup %2812 }
 0x7cf   :  { %880 = vrot.lane.b32.xlu0 %v2813_v28, %s2985_s6 }
 0x7d2   :  { %v2815_v31 = vpop.eup %2814 }
 0x7d3   :  { %765 = vrot.lane.b32.xlu0 %v2815_v31, %s2985_s6 }
 0x841   :  { %v881_v32 = vpop.permute.xlu0 %880 }
 0x842   :  { %v883_v33 = vmul.f32 %v881_v32, %v863_v61 }
 0x844   :  { %v3295_v16 = vmul.f32 %v883_v33, %v3190_v20 }
 0x845   :  { %v766_v35 = vpop.permute.xlu0 %765 }
 0x846   :  { %v3297_v36 = vmul.f32 %v766_v35, %v748_v58  ;;  %v894_v37 = vadd.f32 %v892_v34, %v3295_v16 }
 0x848   :  { %v912_v39 = vrot.slane %v3297_v36, 4  ;;  %v1027_v40 = vrot.slane %v894_v37, 2 }
 0x84a   :  { %1028 = vrot.lane.b32.xlu1 %v1027_v40, %s2986_s21  ;;  %913 = vrot.lane.b32.xlu0 %v912_v39, %s2986_s21 }
 0x84e   :  { %896 = vrot.lane.b32.xlu1 %v865_v14, %s2987_s22  ;;  %v895_v14 = vmul.f32 %v3286_v22, %v3190_v20 }
 0x8bc   :  { %v1029_v42 = vpop.permute.xlu1 %1028  ;;  %v914_v43 = vpop.permute.xlu0 %913 }
 0x8bd   :  { %2512 = vmatmul.mubr.msk.f32.vlgmr.msra.gmra.mrb[6].mxu1 %vm81_vm1, %v914_v43  ;;  %2523 = vmatmul.mubr.msk.f32.vlgmr.msra.gmra.mrb[10].mxu0 %vm81_vm1, %v1029_v42  ;;  %v1133_v9 = vmul.f32 %v1029_v42, %v3188_v18 }
 0x8be   :  { %2696 = vmatpush3.bf16.msra.mxu0 %v3116_v23  ;;  %2690 = vmatpush3.bf16.msra.mxu1 %v3085_v10 }
 0x8bf   :  { %2697 = vmatprep.subr.bf16.mxu0 %v2981_v0  ;;  %2691 = vmatprep.subr.bf16.mxu1 %v2981_v0 }
 0x8c0   :  { %2544 = vmatprep.mubr.msk.f32.mxu0 %vm2983_vm0, %v2982_v1  ;;  %2533 = vmatprep.mubr.msk.f32.mxu1 %vm2983_vm0, %v2982_v1  ;;  %v897_v2 = vpop.permute.xlu1 %896 }
 0x8c1   :  { %v899_v4 = vmul.f32 %v897_v2, %v3188_v18 }
 0x8c2   :  { %2699 = vmatpush3.bf16.msra.mxu0 %v3130_v27  ;;  %2693 = vmatpush3.bf16.msra.mxu1 %v3106_v19 }
 0x8c3   :  { %2700 = vmatprep.subr.bf16.mxu1 %v2981_v0  ;;  %2706 = vmatprep.subr.bf16.mxu0 %v2981_v0 }
 0x990   :  { %v983_v45 = vpop.f32.mrb[6].mxu1  ;;  %v1098_v46 = vpop.f32.mrb[10].mxu0 }
 0x991   :  { %v988_v47 = vrot.slane %v983_v45, 2  ;;  %v1102_v49 = vadd.f32 %v1098_v46, %v3158_v48  ;;  %v2513_v50 = vpop.f32.mrb[7].mxu1  ;;  %v2524_v51 = vpop.f32.mrb[11].mxu0 }
 0x993   :  { %v990_v52 = vadd.f32 %v988_v47, %v3151_v38  ;;  %v2325_v53 = vmul.f32 -1.442695, %v1102_v49 }
 0x995   :  { %v2323_v54 = vmul.f32 -1.442695, %v990_v52  ;;  %2816 = vpow2.f32 %v2325_v53 }
 0x997   :  { %2818 = vpow2.f32 %v2323_v54 }
 0x998   :  { %2820 = vtanh.f32 %v1102_v49 }
 0x999   :  { %2822 = vtanh.f32 %v990_v52 }
 0x99f   :  { %v2817_v55 = vpop.eup %2816 }
 0x9a0   :  { %v1107_v58 = vadd.f32 1.0, %v2817_v55 }
 0x9a1   :  { %v2819_v56 = vpop.eup %2818 }
 0x9a2   :  { %v995_v59 = vadd.f32 1.0, %v2819_v56  ;;  %2824 = vrcp.f32 %v1107_v58  ;;  %v2821_v61 = vpop.eup %2820 }
 0x9a3   :  { %v2823_v62 = vpop.eup %2822 }
 0x9a4   :  { %2826 = vrcp.f32 %v995_v59 }
 0x9ac   :  { %v2825_v63 = vpop.eup %2824 }
 0x9ad   :  { %v1110_v38 = vsel %vm3165_vm4, %v2821_v61, %v2825_v63 }
 0x9ae   :  { %v2827_v48 = vpop.eup %2826  ;;  %1116 = vrot.lane.b32.xlu0 %v1110_v38, %s2985_s6 }
 0x9af   :  { %v998_v3 = vsel %vm3165_vm4, %v2823_v62, %v2827_v48 }
 0x9b0   :  { %1004 = vrot.lane.b32.xlu1 %v998_v3, %s2985_s6  ;;  %v1002_v32 = vmul.f32 %v1000_v21, %v998_v3 }
 0x9b2   :  { %901 = vrot.lane.b32.xlu0 %v899_v4, %s2986_s21 }
 0xa20   :  { %v1117_v5 = vpop.permute.xlu0 %1116 }
 0xa21   :  { %v1119_v6 = vmul.f32 %v1117_v5, %v1110_v38 }
 0xa22   :  { %v1005_v7 = vpop.permute.xlu1 %1004 }
 0xa23   :  { %v1007_v8 = vmul.f32 %v1005_v7, %v998_v3  ;;  %1121 = vrot.lane.b32.xlu1 %v1119_v6, %s2986_s21  ;;  %v3378_v7 = vld [vmem:[%s3654_s1] sm:$0xff] }
 0xa24   :  { %v902_v13 = vpop.permute.xlu0 %901 }
 0xa25   :  { %1009 = vrot.lane.b32.xlu0 %v1007_v8, %s2986_s21  ;;  %v904_v17 = vadd.f32 %v902_v13, %v895_v14 }
 0xa27   :  { %v1112_v12 = vrot.slane %v904_v17, 2 }
 0xa29   :  { %1135 = vrot.lane.b32.xlu0 %v1133_v9, %s2987_s22  ;;  %v1114_v11 = vmul.f32 %v1112_v12, %v1110_v38  ;;  %v1374_v9 = vsub.f32 1.0, %v3378_v7 }
 0xa95   :  { %v1122_v24 = vpop.permute.xlu1 %1121 }
 0xa96   :  { %v3335_v28 = vadd.f32 %v1122_v24, %v1114_v11 }
 0xa97   :  { %v1010_v31 = vpop.permute.xlu0 %1009 }
 0xa98   :  { %2828 = vtanh.f32 %v3335_v28  ;;  %v3338_v33 = vadd.f32 %v1010_v31, %v1002_v32  ;;  %v1139_v21 = vmul.f32 %v3335_v28, %v3190_v20 }
 0xa9a   :  { %2830 = vtanh.f32 %v3338_v33 }
 0xa9b   :  { %v1136_v39 = vpop.permute.xlu0 %1135 }
 0xaa2   :  { %v2829_v34 = vpop.eup %2828 }
 0xaa3   :  { %1127 = vrot.lane.b32.xlu1 %v2829_v34, %s2985_s6 }
 0xaa4   :  { %v2831_v22 = vpop.eup %2830 }
 0xaa7   :  { %1015 = vrot.lane.b32.xlu1 %v2831_v22, %s2985_s6 }
 0xb15   :  { %v1128_v35 = vpop.permute.xlu1 %1127 }
 0xb16   :  { %v1130_v26 = vmul.f32 %v1128_v35, %v1110_v38 }
 0xb18   :  { %v3344_v37 = vmul.f32 %v1130_v26, %v3190_v20 }
 0xb19   :  { %v1016_v40 = vpop.permute.xlu1 %1015 }
 0xb1a   :  { %v3346_v42 = vmul.f32 %v1016_v40, %v998_v3  ;;  %v1138_v43 = vadd.f32 %v1136_v39, %v3344_v37  ;;  %v1241_v39 = vrot.slane %v3338_v33, 6 }
 0xb1c   :  { %v1156_v45 = vrot.slane %v3346_v42, 6  ;;  %1267 = vrot.lane.b32.xlu0 %v1138_v43, %s2986_s21  ;;  %v1380_v13 = vrot.slane %v1138_v43, 2 }
 0xb1e   :  { %1157 = vrot.lane.b32.xlu1 %v1156_v45, %s2986_s21 }
 0xb20   :  { %1140 = vrot.lane.b32.xlu0 %v1112_v12, %s2987_s22 }
 0xb8e   :  { %v1268_v46 = vpop.permute.xlu0 %1267 }
 0xb8f   :  { %2545 = vmatmul.mubr.msk.f32.vlgmr.msra.gmra.mrb[12].mxu0 %vm81_vm1, %v1268_v46 }
 0xb90   :  { %v1158_v47 = vpop.permute.xlu1 %1157  ;;  %2708 = vmatpush3.bf16.msra.mxu0 %v3116_v23  ;;  %2566 = vmatprep.mubr.msk.f32.mxu0 %vm2983_vm0, %v2982_v1 }
 0xb91   :  { %2534 = vmatmul.mubr.msk.f32.vlgmr.msra.gmra.mrb[8].mxu1 %vm81_vm1, %v1158_v47  ;;  %2709 = vmatprep.subr.bf16.mxu0 %v2981_v0 }
 0xb92   :  { %2702 = vmatpush3.bf16.msra.mxu1 %v3085_v10  ;;  %2555 = vmatprep.mubr.msk.f32.mxu1 %vm2983_vm0, %v2982_v1  ;;  %v1141_v4 = vpop.permute.xlu0 %1140 }
 0xb93   :  { %2703 = vmatprep.subr.bf16.mxu1 %v2981_v0  ;;  %v1143_v8 = vmul.f32 %v1141_v4, %v3188_v18 }
 0xb94   :  { %2711 = vmatpush3.bf16.msra.mxu0 %v3130_v27 }
 0xb95   :  { %2718 = vmatprep.subr.bf16.mxu0 %v2981_v0 }
 0xb96   :  { %2705 = vmatpush3.bf16.msra.mxu1 %v3106_v19 }
 0xb97   :  { %2712 = vmatprep.subr.bf16.mxu1 %v2981_v0 }
 0xc62   :  { %v1337_v49 = vpop.f32.mrb[12].mxu0 }
 0xc63   :  { %v1342_v50 = vrot.slane %v1337_v49, 2  ;;  %v2546_v51 = vpop.f32.mrb[13].mxu0 }
 0xc64   :  { %v1227_v52 = vpop.f32.mrb[8].mxu1 }
 0xc65   :  { %v1344_v53 = vadd.f32 %v1342_v50, %v3153_v41  ;;  %v1231_v54 = vadd.f32 %v1227_v52, %v3156_v44  ;;  %v2535_v55 = vpop.f32.mrb[9].mxu1 }
 0xc67   :  { %v2329_v56 = vmul.f32 -1.442695, %v1344_v53  ;;  %v2327_v58 = vmul.f32 -1.442695, %v1231_v54 }
 0xc69   :  { %2832 = vpow2.f32 %v2329_v56 }
 0xc6a   :  { %2834 = vpow2.f32 %v2327_v58 }
 0xc6b   :  { %2836 = vtanh.f32 %v1344_v53 }
 0xc6c   :  { %2838 = vtanh.f32 %v1231_v54 }
 0xc73   :  { %v2833_v59 = vpop.eup %2832 }
 0xc74   :  { %v2835_v61 = vpop.eup %2834  ;;  %v1349_v62 = vadd.f32 1.0, %v2833_v59 }
 0xc75   :  { %v1236_v63 = vadd.f32 1.0, %v2835_v61  ;;  %v2837_v48 = vpop.eup %2836 }
 0xc76   :  { %2840 = vrcp.f32 %v1349_v62  ;;  %v2839_v2 = vpop.eup %2838 }
 0xc77   :  { %2842 = vrcp.f32 %v1236_v63 }
 0xc80   :  { %v2841_v38 = vpop.eup %2840 }
 0xc81   :  { %v2843_v3 = vpop.eup %2842  ;;  %v1352_v5 = vsel %vm3165_vm4, %v2837_v48, %v2841_v38 }
 0xc82   :  { %1358 = vrot.lane.b32.xlu1 %v1352_v5, %s2985_s6  ;;  %v1239_v6 = vsel %vm3165_vm4, %v2839_v2, %v2843_v3 }
 0xc83   :  { %1245 = vrot.lane.b32.xlu0 %v1239_v6, %s2985_s6  ;;  %v1243_v40 = vmul.f32 %v1241_v39, %v1239_v6 }
 0xc86   :  { %1145 = vrot.lane.b32.xlu1 %v1143_v8, %s2986_s21 }
 0xc8a   :  { %1377 = vperm.xlu1 %2767, %v1374_v9  }
 0xc8e   :  { %1381 = vrot.lane.b32.xlu1 %v1380_v13, %s2986_s21 }
 0xcf4   :  { %v1359_v14 = vpop.permute.xlu1 %1358 }
 0xcf5   :  { %v1361_v17 = vmul.f32 %v1359_v14, %v1352_v5  ;;  %v1246_v12 = vpop.permute.xlu0 %1245 }
 0xcf6   :  { %v1248_v24 = vmul.f32 %v1246_v12, %v1239_v6 }
 0xcf7   :  { %1363 = vrot.lane.b32.xlu0 %v1361_v17, %s2986_s21 }
 0xcf8   :  { %v1146_v11 = vpop.permute.xlu1 %1145 }
 0xcf9   :  { %v1148_v31 = vadd.f32 %v1146_v11, %v1139_v21 }
 0xcfb   :  { %1250 = vrot.lane.b32.xlu0 %v1248_v24, %s2986_s21  ;;  %v1354_v22 = vrot.slane %v1148_v31, 2 }
 0xcfd   :  { %v1356_v35 = vmul.f32 %v1354_v22, %v1352_v5 }
 0xcff   :  { %281 = vperm.xlu0 %2766, %v3378_v7  }
 0xd09   :  { %v3389_v18 = vpop.permute.xlu1 %1377 }
 0xd0d   :  { %v1382_v32 = vpop.permute.xlu1 %1381 }
 0xd0e   :  { %v1384_v34 = vmul.f32 %v1382_v32, %v3389_v18 }
 0xd10   :  { %1386 = vrot.lane.b32.xlu0 %v1384_v34, %s2987_s22 }
 0xd69   :  { %v1364_v26 = vpop.permute.xlu0 %1363 }
 0xd6a   :  { %v3394_v28 = vadd.f32 %v1364_v26, %v1356_v35 }
 0xd6c   :  { %2844 = vtanh.f32 %v3394_v28 }
 0xd6d   :  { %v1251_v43 = vpop.permute.xlu0 %1250 }
 0xd6e   :  { %v3397_v45 = vadd.f32 %v1251_v43, %v1243_v40 }
 0xd70   :  { %2846 = vtanh.f32 %v3397_v45 }
 0xd76   :  { %v2845_v46 = vpop.eup %2844 }
 0xd77   :  { %1369 = vrot.lane.b32.xlu1 %v2845_v46, %s2985_s6 }
 0xd7a   :  { %v2847_v47 = vpop.eup %2846 }
 0xd7b   :  { %1256 = vrot.lane.b32.xlu1 %v2847_v47, %s2985_s6 }
 0xd7e   :  { %v3402_v49 = vpop.permute.xlu0 %281 }
 0xd7f   :  { %v1390_v46 = vmul.f32 %v3394_v28, %v3402_v49 }
 0xd82   :  { %v1387_v52 = vpop.permute.xlu0 %1386 }
 0xde9   :  { %v1370_v50 = vpop.permute.xlu1 %1369 }
 0xdea   :  { %v1372_v33 = vmul.f32 %v1370_v50, %v1352_v5 }
 0xdec   :  { %v3405_v51 = vmul.f32 %v1372_v33, %v3402_v49  ;;  %v1493_v33 = vrot.slane %v3397_v45, 6 }
 0xded   :  { %v1257_v53 = vpop.permute.xlu1 %1256 }
 0xdee   :  { %v1389_v54 = vadd.f32 %v1387_v52, %v3405_v51  ;;  %v3408_v55 = vmul.f32 %v1257_v53, %v1239_v6 }
 0xdf0   :  { %1406 = vrot.lane.b32.xlu1 %v3408_v55, %s2986_s21  ;;  %v1519_v56 = vrot.slane %v1389_v54, 6  ;;  %v1627_v40 = vrot.slane %v1389_v54, 2 }
 0xdf2   :  { %1520 = vrot.lane.b32.xlu0 %v1519_v56, %s2986_s21 }
 0xdf6   :  { %1391 = vrot.lane.b32.xlu0 %v1354_v22, %s2987_s22 }
 0xe62   :  { %v1407_v58 = vpop.permute.xlu1 %1406 }
 0xe63   :  { %2556 = vmatmul.mubr.msk.f32.vlgmr.msra.gmra.mrb[10].mxu1 %vm81_vm1, %v1407_v58 }
 0xe64   :  { %v1521_v59 = vpop.permute.xlu0 %1520  ;;  %2714 = vmatpush3.bf16.msra.mxu1 %v3085_v10  ;;  %2577 = vmatprep.mubr.msk.f32.mxu1 %vm2983_vm0, %v2982_v1 }
 0xe65   :  { %2567 = vmatmul.mubr.msk.f32.vlgmr.msra.gmra.mrb[14].mxu0 %vm81_vm1, %v1521_v59  ;;  %2715 = vmatprep.subr.bf16.mxu1 %v2981_v0 }
 0xe66   :  { %2720 = vmatpush3.bf16.msra.mxu0 %v3116_v23  ;;  %2588 = vmatprep.mubr.msk.f32.mxu0 %vm2983_vm0, %v2982_v1 }
 0xe67   :  { %2721 = vmatprep.subr.bf16.mxu0 %v2981_v0 }
 0xe68   :  { %2717 = vmatpush3.bf16.msra.mxu1 %v3106_v19  ;;  %v1392_v31 = vpop.permute.xlu0 %1391 }
 0xe69   :  { %2724 = vmatprep.subr.bf16.mxu1 %v2981_v0  ;;  %v1394_v34 = vmul.f32 %v1392_v31, %v3389_v18 }
 0xe6a   :  { %2723 = vmatpush3.bf16.msra.mxu0 %v3130_v27 }
 0xe6b   :  { %2730 = vmatprep.subr.bf16.mxu0 %v2981_v0 }
 0xf36   :  { %v1476_v61 = vpop.f32.mrb[10].mxu1 }
 0xf37   :  { %v1481_v62 = vrot.slane %v1476_v61, 6  ;;  %v2557_v63 = vpop.f32.mrb[11].mxu1 }
 0xf38   :  { %v1590_v48 = vpop.f32.mrb[14].mxu0 }
 0xf39   :  { %v1483_v2 = vadd.f32 %v1481_v62, %v3156_v44  ;;  %v1595_v38 = vrot.slane %v1590_v48, 4  ;;  %v2568_v3 = vpop.f32.mrb[15].mxu0 }
 0xf3b   :  { %v2331_v4 = vmul.f32 -1.442695, %v1483_v2  ;;  %v1597_v5 = vadd.f32 %v1595_v38, %v3153_v41 }
 0xf3d   :  { %2848 = vpow2.f32 %v2331_v4  ;;  %v2333_v6 = vmul.f32 -1.442695, %v1597_v5 }
 0xf3f   :  { %2850 = vpow2.f32 %v2333_v6 }
 0xf40   :  { %2852 = vtanh.f32 %v1483_v2 }
 0xf47   :  { %v2849_v8 = vpop.eup %2848 }
 0xf48   :  { %v1488_v9 = vadd.f32 1.0, %v2849_v8 }
 0xf49   :  { %v2851_v13 = vpop.eup %2850 }
 0xf4a   :  { %2854 = vrcp.f32 %v1488_v9  ;;  %v1602_v14 = vadd.f32 1.0, %v2851_v13  ;;  %v2853_v17 = vpop.eup %2852 }
 0xf4b   :  { %2856 = vtanh.f32 %v1597_v5 }
 0xf4c   :  { %2858 = vrcp.f32 %v1602_v14 }
 0xf54   :  { %v2855_v12 = vpop.eup %2854 }
 0xf55   :  { %v2857_v21 = vpop.eup %2856  ;;  %v1491_v11 = vsel %vm3165_vm4, %v2853_v17, %v2855_v12 }
 0xf56   :  { %v2859_v24 = vpop.eup %2858  ;;  %1497 = vrot.lane.b32.xlu0 %v1491_v11, %s2985_s6  ;;  %v1495_v58 = vmul.f32 %v1493_v33, %v1491_v11 }
 0xf57   :  { %v1605_v32 = vsel %vm3165_vm4, %v2857_v21, %v2859_v24 }
 0xf58   :  { %1611 = vrot.lane.b32.xlu1 %v1605_v32, %s2985_s6 }
 0xf5c   :  { %1396 = vrot.lane.b32.xlu1 %v1394_v34, %s2986_s21 }
 0xfc8   :  { %v1498_v22 = vpop.permute.xlu0 %1497 }
 0xfc9   :  { %v1500_v35 = vmul.f32 %v1498_v22, %v1491_v11 }
 0xfca   :  { %v1612_v26 = vpop.permute.xlu1 %1611 }
 0xfcb   :  { %v1614_v39 = vmul.f32 %v1612_v26, %v1605_v32  ;;  %1502 = vrot.lane.b32.xlu1 %v1500_v35, %s2986_s21 }
 0xfcd   :  { %1616 = vrot.lane.b32.xlu0 %v1614_v39, %s2986_s21 }
 0xfce   :  { %v1397_v43 = vpop.permute.xlu1 %1396 }
 0xfcf   :  { %v1399_v47 = vadd.f32 %v1397_v43, %v1390_v46 }
 0xfd1   :  { %1628 = vrot.lane.b32.xlu0 %v1627_v40, %s2986_s21  ;;  %v1607_v50 = vrot.slane %v1399_v47, 2 }
 0xfd3   :  { %v1609_v52 = vmul.f32 %v1607_v50, %v1605_v32 }
0x103d   :  { %v1503_v53 = vpop.permute.xlu1 %1502 }
0x103e   :  { %v3446_v61 = vadd.f32 %v1503_v53, %v1495_v58 }
0x103f   :  { %v1617_v56 = vpop.permute.xlu0 %1616 }
0x1040   :  { %v3444_v59 = vadd.f32 %v1617_v56, %v1609_v52 }
0x1042   :  { %2860 = vtanh.f32 %v3444_v59 }
0x1043   :  { %v1629_v54 = vpop.permute.xlu0 %1628  ;;  %2862 = vtanh.f32 %v3446_v61 }
0x1044   :  { %v1631_v62 = vmul.f32 %v1629_v54, %v3389_v18  ;;  %v1637_v54 = vmul.f32 %v3444_v59, %v3402_v49 }
0x1046   :  { %1633 = vrot.lane.b32.xlu0 %v1631_v62, %s2987_s22 }
0x104c   :  { %v2861_v28 = vpop.eup %2860 }
0x104d   :  { %1622 = vrot.lane.b32.xlu1 %v2861_v28, %s2985_s6  ;;  %v2863_v45 = vpop.eup %2862 }
0x1051   :  { %1508 = vrot.lane.b32.xlu1 %v2863_v45, %s2985_s6  ;;  %v1741_v45 = vrot.slane %v3446_v61, 6 }
0x10b8   :  { %v1634_v38 = vpop.permute.xlu0 %1633 }
0x10bf   :  { %v1623_v63 = vpop.permute.xlu1 %1622 }
0x10c0   :  { %v1625_v48 = vmul.f32 %v1623_v63, %v1605_v32 }
0x10c2   :  { %v3455_v2 = vmul.f32 %v1625_v48, %v3402_v49 }
0x10c3   :  { %v1509_v3 = vpop.permute.xlu1 %1508 }
0x10c4   :  { %v1636_v4 = vadd.f32 %v1634_v38, %v3455_v2  ;;  %v3458_v5 = vmul.f32 %v1509_v3, %v1491_v11 }
0x10c6   :  { %v1653_v6 = vrot.slane %v3458_v5, 2  ;;  %v1767_v8 = vrot.slane %v1636_v4, 4  ;;  %v1875_v56 = vrot.slane %v1636_v4, 2 }
0x10c8   :  { %1768 = vrot.lane.b32.xlu0 %v1767_v8, %s2986_s21  ;;  %1654 = vrot.lane.b32.xlu1 %v1653_v6, %s2986_s21 }
0x10cc   :  { %1638 = vrot.lane.b32.xlu0 %v1607_v50, %s2987_s22 }
0x113a   :  { %v1769_v9 = vpop.permute.xlu0 %1768  ;;  %v1655_v13 = vpop.permute.xlu1 %1654 }
0x113b   :  { %2578 = vmatmul.mubr.msk.f32.vlgmr.msra.gmra.mrb[12].mxu1 %vm81_vm1, %v1655_v13  ;;  %2589 = vmatmul.mubr.msk.f32.vlgmr.msra.gmra.mrb[16].mxu0 %vm81_vm1, %v1769_v9 }
0x113c   :  { %2726 = vmatpush3.bf16.msra.mxu1 %v3085_v10  ;;  %2732 = vmatpush3.bf16.msra.mxu0 %v3116_v23 }
0x113d   :  { %2727 = vmatprep.subr.bf16.mxu1 %v2981_v0  ;;  %2599 = vmatprep.mubr.msk.f32.mxu1 %vm2983_vm0, %v2982_v1 }
0x113e   :  { %2733 = vmatprep.subr.bf16.mxu0 %v2981_v0  ;;  %2610 = vmatprep.mubr.msk.f32.mxu0 %vm2983_vm0, %v2982_v1  ;;  %v1639_v43 = vpop.permute.xlu0 %1638 }
0x113f   :  { %v1641_v47 = vmul.f32 %v1639_v43, %v3389_v18 }
0x1140   :  { %2729 = vmatpush3.bf16.msra.mxu1 %v3106_v19  ;;  %2735 = vmatpush3.bf16.msra.mxu0 %v3130_v27 }
0x120e   :  { %v1724_v14 = vpop.f32.mrb[12].mxu1  ;;  %v1838_v17 = vpop.f32.mrb[16].mxu0 }
0x120f   :  { %v1729_v12 = vrot.slane %v1724_v14, 4  ;;  %v1843_v10 = vrot.slane %v1838_v17, 6  ;;  %v2579_v21 = vpop.f32.mrb[13].mxu1  ;;  %v2590_v23 = vpop.f32.mrb[17].mxu0 }
0x1211   :  { %v1731_v11 = vadd.f32 %v1729_v12, %v3156_v44  ;;  %v1845_v24 = vadd.f32 %v1843_v10, %v3153_v41 }
0x1213   :  { %v2335_v31 = vmul.f32 -1.442695, %v1731_v11  ;;  %v2337_v32 = vmul.f32 -1.442695, %v1845_v24 }
0x1215   :  { %2864 = vpow2.f32 %v2335_v31 }
0x1216   :  { %2866 = vpow2.f32 %v2337_v32 }
0x1217   :  { %2868 = vtanh.f32 %v1731_v11 }
0x1218   :  { %2870 = vtanh.f32 %v1845_v24 }
0x121f   :  { %v2865_v0 = vpop.eup %2864 }
0x1220   :  { %v2867_v34 = vpop.eup %2866  ;;  %v1736_v19 = vadd.f32 1.0, %v2865_v0 }
0x1221   :  { %v1850_v27 = vadd.f32 1.0, %v2867_v34  ;;  %v2869_v22 = vpop.eup %2868 }
0x1222   :  { %2872 = vrcp.f32 %v1736_v19  ;;  %v2871_v35 = vpop.eup %2870 }
0x1223   :  { %2874 = vrcp.f32 %v1850_v27 }
0x122c   :  { %v2873_v26 = vpop.eup %2872 }
0x122d   :  { %v2875_v39 = vpop.eup %2874  ;;  %v1739_v40 = vsel %vm3165_vm4, %v2869_v22, %v2873_v26 }
0x122e   :  { %v1853_v46 = vsel %vm3165_vm4, %v2871_v35, %v2875_v39  ;;  %1745 = vrot.lane.b32.xlu0 %v1739_v40, %s2985_s6  ;;  %v1743_v63 = vmul.f32 %v1741_v45, %v1739_v40 }
0x122f   :  { %1859 = vrot.lane.b32.xlu1 %v1853_v46, %s2985_s6 }
0x1233   :  { %1643 = vrot.lane.b32.xlu1 %v1641_v47, %s2986_s21 }
0x12a0   :  { %v1746_v50 = vpop.permute.xlu0 %1745 }
0x12a1   :  { %v1860_v33 = vpop.permute.xlu1 %1859  ;;  %v1748_v52 = vmul.f32 %v1746_v50, %v1739_v40 }
0x12a2   :  { %v1862_v53 = vmul.f32 %v1860_v33, %v1853_v46 }
0x12a3   :  { %1750 = vrot.lane.b32.xlu1 %v1748_v52, %s2986_s21 }
0x12a4   :  { %1864 = vrot.lane.b32.xlu0 %v1862_v53, %s2986_s21 }
0x12a5   :  { %v1644_v58 = vpop.permute.xlu1 %1643 }
0x12a6   :  { %v1646_v62 = vadd.f32 %v1644_v58, %v1637_v54 }
0x12a8   :  { %1876 = vrot.lane.b32.xlu0 %v1875_v56, %s2986_s21  ;;  %v1855_v28 = vrot.slane %v1646_v62, 2 }
0x12aa   :  { %v1857_v38 = vmul.f32 %v1855_v28, %v1853_v46 }
0x1315   :  { %v1751_v48 = vpop.permute.xlu1 %1750 }
0x1316   :  { %v3492_v3 = vadd.f32 %v1751_v48, %v1743_v63  ;;  %v1865_v6 = vpop.permute.xlu0 %1864 }
0x1317   :  { %v3494_v8 = vadd.f32 %v1865_v6, %v1857_v38 }
0x1318   :  { %2876 = vtanh.f32 %v3492_v3  ;;  %v1989_v6 = vrot.slane %v3492_v3, 6  ;;  %v284_v3 = vmul.f32 %v3402_v49, %v3200_v29  ;;  %v1512_v29 = vmul.f32 %v3458_v5, %v3190_v20 }
0x1319   :  { %2878 = vtanh.f32 %v3494_v8  ;;  %v1885_v48 = vmul.f32 %v3494_v8, %v3402_v49  ;;  %v519_v8 = vmul.f32 %v3248_v30, %v3402_v49  ;;  %v2127_v30 = vld [vmem:[%s3660_s7] sm:$0xff] }
0x131a   :  { %v1877_v13 = vpop.permute.xlu0 %1876 }
0x131b   :  { %v1879_v59 = vmul.f32 %v1877_v13, %v3389_v18 }
0x1322   :  { %v2877_v4 = vpop.eup %2876 }
0x1323   :  { %v2879_v9 = vpop.eup %2878  ;;  %1756 = vrot.lane.b32.xlu0 %v2877_v4, %s2985_s6 }
0x1324   :  { %1870 = vrot.lane.b32.xlu1 %v2879_v9, %s2985_s6 }
0x1328   :  { %1881 = vrot.lane.b32.xlu1 %v1879_v59, %s2987_s22 }
0x1395   :  { %v1757_v61 = vpop.permute.xlu0 %1756 }
0x1396   :  { %v1871_v14 = vpop.permute.xlu1 %1870  ;;  %v3502_v17 = vmul.f32 %v1757_v61, %v1739_v40 }
0x1397   :  { %v1873_v12 = vmul.f32 %v1871_v14, %v1853_v46 }
0x1398   :  { %v1901_v10 = vrot.slane %v3502_v17, 4 }
0x1399   :  { %v3506_v21 = vmul.f32 %v1873_v12, %v3402_v49 }
0x139a   :  { %v1882_v23 = vpop.permute.xlu1 %1881  ;;  %1902 = vrot.lane.b32.xlu0 %v1901_v10, %s2986_s21 }
0x139b   :  { %v1884_v11 = vadd.f32 %v1882_v23, %v3506_v21  ;;  %v1019_v23 = vmul.f32 %v3346_v42, %v3402_v49  ;;  %v2130_v42 = vld [vmem:[%s3660_s7 + $0x18] sm:$0xff] }
0x139d   :  { %v2015_v24 = vrot.slane %v1884_v11, 2  ;;  %v769_v11 = vmul.f32 %v3297_v36, %v3402_v49  ;;  %v1760_v36 = vmul.f32 %v3502_v17, %v3190_v20  ;;  %v2133_v17 = vld [vmem:[%s3660_s7 + $0x30] sm:$0xff] }
0x139e   :  { %1886 = vrot.lane.b32.xlu0 %v1855_v28, %s2987_s22 }
0x139f   :  { %2016 = vrot.lane.b32.xlu1 %v2015_v24, %s2986_s21 }
0x140c   :  { %v1903_v31 = vpop.permute.xlu0 %1902 }
0x140d   :  { %2600 = vmatmul.mubr.msk.f32.vlgmr.msra.gmra.mrb[14].mxu1 %vm81_vm1, %v1903_v31 }
0x1410   :  { %v1887_v56 = vpop.permute.xlu0 %1886 }
0x1411   :  { %v2017_v32 = vpop.permute.xlu1 %2016  ;;  %v1889_v54 = vmul.f32 %v1887_v56, %v3389_v18 }
0x1412   :  { %2611 = vmatmul.mubr.msk.f32.vlgmr.msra.gmra.mrb[18].mxu0 %vm81_vm1, %v2017_v32  ;;  %vm2275_vm1 = vcmask 7168  }
0x14e0   :  { %v1972_v0 = vpop.f32.mrb[14].mxu1 }
0x14e1   :  { %v1977_v34 = vrot.slane %v1972_v0, 2  ;;  %v2601_v19 = vpop.f32.mrb[15].mxu1 }
0x14e3   :  { %v1979_v27 = vadd.f32 %v1977_v34, %v3156_v44 }
0x14e5   :  { %v2339_v22 = vmul.f32 -1.442695, %v1979_v27  ;;  %v2086_v35 = vpop.f32.mrb[18].mxu0 }
0x14e6   :  { %v2090_v26 = vadd.f32 %v2086_v35, %v3153_v41  ;;  %v2612_v39 = vpop.f32.mrb[19].mxu0 }
0x14e7   :  { %2880 = vpow2.f32 %v2339_v22 }
0x14e8   :  { %v2341_v40 = vmul.f32 -1.442695, %v2090_v26 }
0x14ea   :  { %2882 = vpow2.f32 %v2341_v40 }
0x14eb   :  { %2884 = vtanh.f32 %v1979_v27 }
0x14f1   :  { %v2881_v43 = vpop.eup %2880 }
0x14f2   :  { %v1984_v46 = vadd.f32 1.0, %v2881_v43 }
0x14f4   :  { %v2883_v47 = vpop.eup %2882  ;;  %2886 = vrcp.f32 %v1984_v46 }
0x14f5   :  { %v2095_v50 = vadd.f32 1.0, %v2883_v47  ;;  %2888 = vtanh.f32 %v2090_v26  ;;  %v2885_v33 = vpop.eup %2884 }
0x14f7   :  { %2890 = vrcp.f32 %v2095_v50 }
0x14fe   :  { %v2887_v52 = vpop.eup %2886 }
0x14ff   :  { %v3518_v44 = vsel %vm3165_vm4, %v2885_v33, %v2887_v52  ;;  %v2889_v53 = vpop.eup %2888 }
0x1500   :  { %1993 = vrot.lane.b32.xlu0 %v3518_v44, %s2985_s6  ;;  %v1991_v4 = vmul.f32 %v1989_v6, %v3518_v44  ;;  %v2249_v6 = vld [vmem:[%s3655_s2] sm:$0xff] }
0x1501   :  { %v2891_v41 = vpop.eup %2890 }
0x1502   :  { %v3524_v58 = vsel %vm3165_vm4, %v2889_v53, %v2891_v41 }
0x1503   :  { %2104 = vrot.lane.b32.xlu1 %v3524_v58, %s2985_s6 }
0x1507   :  { %1891 = vrot.lane.b32.xlu1 %v1889_v54, %s2986_s21  ;;  %v2342_v54 = vld [vmem:[%s3661_s8] ss:$0 sm:$0xff] }
0x1572   :  { %v1994_v62 = vpop.permute.xlu0 %1993 }
0x1573   :  { %v1996_v28 = vmul.f32 %v1994_v62, %v3518_v44 }
0x1575   :  { %v2105_v45 = vpop.permute.xlu1 %2104  ;;  %1998 = vrot.lane.b32.xlu1 %v1996_v28, %s2986_s21 }
0x1576   :  { %v2107_v63 = vmul.f32 %v2105_v45, %v3524_v58 }
0x1578   :  { %2109 = vrot.lane.b32.xlu0 %v2107_v63, %s2986_s21 }
0x1579   :  { %v1892_v60 = vpop.permute.xlu1 %1891 }
0x157a   :  { %v1894_v38 = vadd.f32 %v1892_v60, %v1885_v48 }
0x157c   :  { %v2100_v18 = vrot.slane %v1894_v38, 2  ;;  %v2250_v38 = vld [vmem:[%s3655_s2 + $0x8] sm:$0xff] }
0x157e   :  { %v2102_v59 = vmul.f32 %v2100_v18, %v3524_v58 }
0x15e7   :  { %v1999_v9 = vpop.permute.xlu1 %1998 }
0x15e8   :  { %v2001_v13 = vadd.f32 %v1999_v9, %v1991_v4 }
0x15ea   :  { %2892 = vtanh.f32 %v2001_v13  ;;  %v2110_v61 = vpop.permute.xlu0 %2109 }
0x15eb   :  { %v2112_v14 = vadd.f32 %v2110_v61, %v2102_v59 }
0x15ed   :  { %2894 = vtanh.f32 %v2112_v14 }
0x15f4   :  { %v2893_v12 = vpop.eup %2892 }
0x15f5   :  { %2004 = vrot.lane.b32.xlu1 %v2893_v12, %s2985_s6 }
0x15f7   :  { %v2895_v10 = vpop.eup %2894 }
0x15f8   :  { %2115 = vrot.lane.b32.xlu0 %v2895_v10, %s2985_s6 }
0x15f9   :  { %521 = vrot.lane.b32.xlu1 %v519_v8, %s2986_s21 }
0x15fc   :  { %286 = vrot.lane.b32.xlu0 %v284_v3, %s2986_s21 }
0x15fd   :  { %1021 = vrot.lane.b32.xlu1 %v1019_v23, %s2986_s21 }
0x1600   :  { %771 = vrot.lane.b32.xlu0 %v769_v11, %s2986_s21 }
0x1601   :  { %656 = vrot.lane.b32.xlu1 %v3245_v15, %s2985_s6 }
0x1604   :  { %407 = vrot.lane.b32.xlu0 %v3196_v25, %s2985_s6  ;;  %v2128_v25 = vld [vmem:[%s3660_s7 + $0x8] sm:$0xff] }
0x1605   :  { %1150 = vrot.lane.b32.xlu1 %v3344_v37, %s2985_s6  ;;  %v2736_v15 = vpack.c.bf16 %v2128_v25, %v2127_v30  ;;  %v2129_v37 = vld [vmem:[%s3660_s7 + $0x10] sm:$0xff] }
0x1607   :  { %2737 = vmatprep.subr.bf16.mxu1 %v2736_v15 }
0x1608   :  { %906 = vrot.lane.b32.xlu0 %v3295_v16, %s2985_s6  ;;  %2739 = vmatpush3.bf16.msra.mxu1 %v2736_v15  ;;  %v1260_v16 = vmul.f32 %v3408_v55, %v3190_v20  ;;  %v2131_v55 = vld [vmem:[%s3660_s7 + $0x20] sm:$0xff] }
0x1609   :  { %1648 = vrot.lane.b32.xlu1 %v3455_v2, %s2985_s6  ;;  %v2132_v2 = vld [vmem:[%s3660_s7 + $0x28] sm:$0xff] }
0x160a   :  { %v2744_v5 = vpack.c.bf16 %v2132_v2, %v2131_v55 }
0x160c   :  { %1401 = vrot.lane.b32.xlu0 %v3405_v51, %s2985_s6  ;;  %v2740_v51 = vpack.c.bf16 %v2130_v42, %v2129_v37 }
0x160d   :  { %1514 = vrot.lane.b32.xlu1 %v1512_v29, %s2986_s21 }
0x160e   :  { %2741 = vmatprep.subr.bf16.mxu1 %v2740_v51 }
0x160f   :  { %2743 = vmatpush3.bf16.msra.mxu1 %v2740_v51 }
0x1610   :  { %1896 = vrot.lane.b32.xlu0 %v3506_v21, %s2985_s6  ;;  %2745 = vmatprep.subr.bf16.mxu1 %v2744_v5  ;;  %v2134_v21 = vld [vmem:[%s3660_s7 + $0x38] sm:$0xff] }
0x1611   :  { %v2748_v31 = vpack.c.bf16 %v2134_v21, %v2133_v17 }
0x1613   :  { %2747 = vmatpush3.bf16.msra.mxu1 %v2744_v5 }
0x1614   :  { %1262 = vrot.lane.b32.xlu0 %v1260_v16, %s2986_s21  ;;  %2749 = vmatprep.subr.bf16.mxu1 %v2748_v31 }
0x1617   :  { %2751 = vmatpush3.bf16.msra.mxu1 %v2748_v31  ;;  %v2904_v31 = vld [vmem:[%s3654_s1 + $0x8] sm:$0xff] }
0x1618   :  { %1762 = vrot.lane.b32.xlu0 %v1760_v36, %s2986_s21 }
0x1667   :  { %v2005_v24 = vpop.permute.xlu1 %2004 }
0x1668   :  { %v2007_v19 = vmul.f32 %v2005_v24, %v3518_v44 }
0x166a   :  { %v2116_v32 = vpop.permute.xlu0 %2115  ;;  %v2008_v26 = vmul.f32 %v2007_v19, %v3190_v20 }
0x166b   :  { %v2118_v0 = vmul.f32 %v2116_v32, %v3524_v58  ;;  %v522_v34 = vpop.permute.xlu1 %521 }
0x166c   :  { %525 = vst.msk [vmem:[#allocation2] sm:$0xc] %vm524_vm5, %v522_v34 }
0x166d   :  { %v2119_v27 = vmul.f32 %v2118_v0, %v3402_v49 }
0x166e   :  { %v287_v22 = vpop.permute.xlu0 %286 }
0x166f   :  { %290 = vst.msk [vmem:[#allocation2] sm:$0x3] %vm289_vm6, %v287_v22  ;;  %2121 = vrot.lane.b32.xlu1 %v2119_v27, %s2985_s6  ;;  %v1022_v35 = vpop.permute.xlu1 %1021 }
0x1670   :  { %1025 = vst.msk [vmem:[#allocation2] sm:$0xc0] %vm1024_vm7, %v1022_v35 }
0x1672   :  { %v772_v39 = vpop.permute.xlu0 %771 }
0x1673   :  { %775 = vst.msk [vmem:[#allocation2] sm:$0x30] %vm774_vm8, %v772_v39  ;;  %2010 = vrot.lane.b32.xlu1 %v2008_v26, %s2986_s21  ;;  %v657_v40 = vpop.permute.xlu1 %656  ;;  %s2300_s21 = sshll.u32 %s2988_s20, 4  ;;  %s2301_s21 = int_to_ptr.vmem [resolvable:$true] %s2300_s21 }
0x1674   :  { %660 = vst.msk [vmem:[#allocation2 + $0x8] sm:$0x30] %vm659_vm9, %v657_v40  ;;  %s2949_s1 = scalar_lea.vmem %s2301_s21, 16  ;;  %s2953_s24 = scalar_lea.vmem %s2301_s21, 32 }
0x1675   :  { %p2950_p2 = scmp.ne.s32.totalorder %s2301_s21, %s2949_s1  ;;  %p2954_p3 = scmp.lt.s32.totalorder %s2301_s21, %s2301_s21 }
0x1676   :  { %v408_v49 = vpop.permute.xlu0 %407  ;;  %p2955_p4 = scmp.lt.s32.totalorder %s2953_s24, %s2949_s1 }
0x1677   :  { %411 = vst.msk [vmem:[#allocation2 + $0x8] sm:$0xc0] %vm410_vm10, %v408_v49  ;;  %v1151_v43 = vpop.permute.xlu1 %1150 }
0x1678   :  { %1154 = vst.msk [vmem:[#allocation2 + $0x8] sm:$0x3] %vm1153_vm11, %v1151_v43  ;;  %p2956_p5 = por %p2955_p4, %p2954_p3 }
0x167a   :  { %v907_v46 = vpop.permute.xlu0 %906  ;;  %p2957_p6 = pnand %p2956_p5, %p2950_p2 }
0x167b   :  { %910 = vst.msk [vmem:[#allocation2 + $0x8] sm:$0xc] %vm909_vm12, %v907_v46  ;;  %v1649_v20 = vpop.permute.xlu1 %1648 }
0x167c   :  { %1651 = vst.msk [vmem:[#allocation2] sm:$0x30] %vm659_vm9, %v1649_v20 }
0x167e   :  { %v1402_v47 = vpop.permute.xlu0 %1401 }
0x167f   :  { %1404 = vst.msk [vmem:[#allocation2] sm:$0xc0] %vm410_vm10, %v1402_v47  ;;  %v1515_v50 = vpop.permute.xlu1 %1514 }
0x1680   :  { %1517 = vst.msk [vmem:[#allocation2 + $0x8] sm:$0xc] %vm524_vm5, %v1515_v50 }
0x1682   :  { %v1897_v33 = vpop.permute.xlu0 %1896 }
0x1683   :  { %1899 = vst.msk [vmem:[#allocation2] sm:$0xc] %vm909_vm12, %v1897_v33 }
0x1686   :  { %v1263_v52 = vpop.permute.xlu0 %1262 }
0x1687   :  { %1265 = vst.msk [vmem:[#allocation2 + $0x8] sm:$0x3] %vm289_vm6, %v1263_v52 }
0x168a   :  { %v1763_v44 = vpop.permute.xlu0 %1762 }
0x168b   :  { %1765 = vst.msk [vmem:[#allocation2 + $0x8] sm:$0x30] %vm774_vm8, %v1763_v44 }
0x16e1   :  { %v2122_v53 = vpop.permute.xlu1 %2121 }
0x16e2   :  { %2124 = vst.msk [vmem:[#allocation2] sm:$0x3] %vm1153_vm11, %v2122_v53 }
0x16e5   :  { %v2011_v41 = vpop.permute.xlu1 %2010 }
0x16e6   :  { %2013 = vst.msk [vmem:[#allocation2 + $0x8] sm:$0xc0] %vm1024_vm7, %v2011_v41 }
0x16e9   :  { %v2125_v56 = vld [vmem:[#allocation2] sm:$0xff] }
0x16ea   :  { %2629 = vmatprep.mubr.msk.f32.mxu1 %vm2142_vm13, %v2125_v56 }
0x16ed   :  { %v2126_v58 = vld [vmem:[#allocation2 + $0x8] sm:$0xff] }
0x16ee   :  { %2630 = vmatmul.mubr.msk.f32.vlgmr.msra.gmra.mrb[16].mxu1 %vm2142_vm13, %v2126_v58 }
0x17c1   :  { %v2631_v62 = vpop.f32.mrb[16].mxu1 }
0x17c2   :  { %v2221_v28 = vadd.f32 %v2631_v62, %v2342_v54  ;;  %v2215_v45 = vpop.f32.mrb[17].mxu1 }
0x17c3   :  { %v2216_v63 = vadd.f32 %v2342_v54, %v2215_v45 }
0x17c4   :  { %v2228_v60 = vsel %vm2224_vm14, %v2221_v28, -inf }
0x17c5   :  { %2229 = vmax.xlane.f32.xlu1 %v2228_v60  ;;  %v2225_v48 = vsel %vm2224_vm14, %v2216_v63, -inf }
0x17c6   :  { %2226 = vmax.xlane.f32.xlu0 %v2225_v48 }
0x17d6   :  { %2255 = vperm.xlu1 %2767, %v2250_v38  }
0x17dc   :  { %2252 = vperm.xlu0 %2766, %v2249_v6  }
0x1852   :  { %v2230_v18 = vpop.xlane.xlu1 %2229 }
0x1853   :  { %v2232_v4 = vsub.f32 %v2221_v28, %v2230_v18  ;;  %v2227_v9 = vpop.xlane.xlu0 %2226 }
0x1854   :  { %v2231_v13 = vsub.f32 %v2216_v63, %v2227_v9 }
0x1855   :  { %v2235_v59 = vmul.f32 1.442695, %v2232_v4 }
0x1856   :  { %v2233_v61 = vmul.f32 1.442695, %v2231_v13  ;;  %v2256_v12 = vpop.permute.xlu1 %2255 }
0x1857   :  { %2896 = vpow2.f32 %v2235_v59  ;;  %vm2258_vm0 = vcmp.eq.s32.totalorder %v3161_v57, %v2256_v12 }
0x1858   :  { %2898 = vpow2.f32 %v2233_v61  ;;  %v2346_v30 = vsel %vm2258_vm0, 1.0, %v2982_v1 }
0x1859   :  { %v2264_v25 = vmul.f32 %v2346_v30, %v2221_v28 }
0x185b   :  { %v2253_v14 = vpop.permute.xlu0 %2252  ;;  %v2268_v16 = vsel %vm2224_vm14, %v2264_v25, 0.0 }
0x185c   :  { %vm2257_vm15 = vcmp.eq.s32.totalorder %v3161_v57, %v2253_v14 }
0x185d   :  { %v2345_v10 = vsel %vm2257_vm15, 1.0, %v2982_v1 }
0x185e   :  { %v2263_v11 = vmul.f32 %v2345_v10, %v2216_v63 }
0x1860   :  { %v2265_v15 = vsel %vm2224_vm14, %v2263_v11, 0.0 }
0x1861   :  { %v2897_v8 = vpop.eup %2896 }
0x1862   :  { %v2899_v3 = vpop.eup %2898  ;;  %v2240_v23 = vsel %vm2224_vm14, %v2897_v8, 0.0 }
0x1863   :  { %2241 = vadd.xlane.f32.xlu1 %v2240_v23  ;;  %v2237_v29 = vsel %vm2224_vm14, %v2899_v3, 0.0 }
0x1864   :  { %2238 = vadd.xlane.f32.xlu0 %v2237_v29 }
0x1868   :  { %2266 = vadd.xlane.f32.xlu0 %v2265_v15 }
0x186c   :  { %2269 = vadd.xlane.f32.xlu0 %v2268_v16 }
0x18f0   :  { %v2242_v36 = vpop.xlane.xlu1 %2241 }
0x18f1   :  { %2900 = vlog2.f32 %v2242_v36  ;;  %v2239_v57 = vpop.xlane.xlu0 %2238 }
0x18f2   :  { %2902 = vlog2.f32 %v2239_v57 }
0x18f5   :  { %v2267_v37 = vpop.xlane.xlu0 %2266 }
0x18f9   :  { %v2270_v1 = vpop.xlane.xlu0 %2269 }
0x18fb   :  { %v2901_v42 = vpop.eup %2900 }
0x18fc   :  { %v2903_v51 = vpop.eup %2902  ;;  %v2246_v55 = vmul.f32 0.6931472, %v2901_v42 }
0x18fd   :  { %v2244_v2 = vmul.f32 0.6931472, %v2903_v51 }
0x18fe   :  { %v2248_v5 = vadd.f32 %v2246_v55, %v2230_v18 }
0x18ff   :  { %v2247_v17 = vadd.f32 %v2244_v2, %v2227_v9 }
0x1900   :  { %v2272_v21 = vsub.f32 %v2248_v5, %v2270_v1 }
0x1901   :  { %v2271_v24 = vsub.f32 %v2247_v17, %v2267_v37 }
0x1902   :  { %v2274_v32 = vmul.f32 %v2904_v31, %v2272_v21 }
0x1903   :  { %v2273_v0 = vmul.f32 %v2271_v24, %v3378_v7 }
0x1904   :  { %v2277_v34 = vsel %vm2275_vm1, %v2274_v32, 0.0 }
0x1905   :  { %v2276_v19 = vsel %vm2275_vm1, %v2273_v0, 0.0 }
0x1906   :  { %v2278_v27 = vadd.f32 %v2277_v34, %v2276_v19 }
0x1908   :  { %2279 = vadd.xlane.f32.xlu1 %v2278_v27 }
0x1995   :  { %v2280_v22 = vpop.xlane.xlu1 %2279 }
0x1996   :  { %v2281_v35 = vrot.slane %v2280_v22, 4 }
0x1998   :  { %v2282_v26 = vadd.f32 %v2281_v35, %v2280_v22 }
0x199a   :  { %v2283_v39 = vrot.slane %v2282_v26, 2 }
0x199c   :  { %v2284_v40 = vadd.f32 %v2283_v39, %v2282_v26 }
0x199e   :  { %v2285_v49 = vrot.slane %v2284_v40, 1 }
0x19a0   :  { %v2286_v43 = vadd.f32 %v2285_v49, %v2284_v40 }
0x19a2   :  { %2752 = vpush %v2286_v43 }
0x19d3   :  { %s2753_s22 = spop %2752 }
0x19d4   :  { %s2290_s23 = smul.f32 0.0625, %s2753_s22 }
0x19d6   :  { %v2291_v46 = vstv %s2290_s23 }
0x19d7   :  { %2293 = vst.msk [vmem:[#allocation8] sm:$0x1] %vm2292_vm2, %v2291_v46 }
0x19d8   :  { %2960 = shalt.err (!%p2957_p6)
}
0x19d9   :  { %s2961_s27 = scalar_lea.hbm %s3662_s9, 16 }
0x19da   :  { %p2962_p7 = scmp.ne.s32.totalorder %s3662_s9, %s2961_s27  ;;  %p2965_p8 = scmp.lt.u32.totalorder %s2961_s27, %s3662_s9 }
0x19dc   :  { %p2967_p9 = pnand %p2965_p8, %p2962_p7 }
0x19de   :  { %2970 = shalt.err (!%p2967_p9)
}
0x19df   :  { %2303 = dma.vmem_to_hbm [thread:$0]  %s2301_s21, 16, %s3662_s9, [#allocation5]  }
0x19e0   :  { %2975 = dma.done.wait [#allocation5], 16  }
0x19e1   :  { %2976 = vsyncadd [#allocation5], 4294967280 }
0x19e2   :  { %2307 = vsyncpa [#allocation4], 1 }
0x19e3   :  { %2308 = vsyncpa [#allocation7], 1 }
0x19e4   :  { %2309 = vsyncpa [#allocation5], 1 }

</bundles_post_ra>
